<compile_context>
chip_gen: v6e
topology: v6e:2x2x1
jax: 0.10.0
libtpu: 0.0.40
codegen_flags: <defaults>
</compile_context>

<pallas_src>
import jax
import jax.numpy as jnp
import numpy as np
from jax.experimental import pallas as pl
from jax.experimental.pallas import tpu as pltpu

INPUT_SIZE = 40
HIDDEN = 128
FC1_DIM = 64
NUM_CLASSES = 8
FC1_PAD = 128      # lane-dense fc1 width (zero-padded)
OUT_PAD = 128      # lane-dense output slab; sliced to NUM_CLASSES in the wrapper
SUBLANE = 8        # pad batch to a full sublane tile


def _make_kernel(T, Bp, D):
    H = HIDDEN

    def kernel(x_ref, wih_ref, bg_ref,                    # auto-DMA'd: needed by 1st matmul
               whh_hbm, w1_hbm, b1_hbm, w2_hbm, b2_hbm,   # pl.ANY -> manual DMA (overlapped)
               out_ref,                                   # (Bp, OUT_PAD)
               xg_ref,                                    # VMEM scratch (T*Bp, 8H)
               whh_buf, w1_buf, b1_buf, w2_buf, b2_buf,   # VMEM landing buffers
               sems):                                     # DMA semaphores (5,)
        # ---- kick off DMAs for weights NOT needed by the hoisted projection ----
        whh_cp = pltpu.make_async_copy(whh_hbm, whh_buf, sems.at[0]); whh_cp.start()
        w1_cp = pltpu.make_async_copy(w1_hbm, w1_buf, sems.at[1]); w1_cp.start()
        b1_cp = pltpu.make_async_copy(b1_hbm, b1_buf, sems.at[2]); b1_cp.start()
        w2_cp = pltpu.make_async_copy(w2_hbm, w2_buf, sems.at[3]); w2_cp.start()
        b2_cp = pltpu.make_async_copy(b2_hbm, b2_buf, sems.at[4]); b2_cp.start()

        # ---- hoisted input projection: all T steps, fwd+bwd gate columns, one MXU pass ----
        xg_ref[...] = (jnp.dot(x_ref[...].astype(jnp.bfloat16), wih_ref[...],
                               preferred_element_type=jnp.float32)
                       + bg_ref[...])

        # ---- t = 0 peeled: h = c = 0 -> no recurrent matmul, no f-gate ----
        g0 = xg_ref[0:Bp, 0:4 * H]
        c = jax.nn.sigmoid(g0[:, 0:H]) * jnp.tanh(g0[:, 2 * H:3 * H])
        h = jax.nn.sigmoid(g0[:, 3 * H:4 * H]) * jnp.tanh(c)

        # ---- backward-direction output at the last time index ----
        # PyTorch's bi-LSTM output[:, -1, H:] is one backward step on x[T-1] from a zero
        # state, so the recurrent term and f-gate vanish; gates come from the hoisted pass.
        gb = xg_ref[(T - 1) * Bp:T * Bp, 4 * H:8 * H]
        cb = jax.nn.sigmoid(gb[:, 0:H]) * jnp.tanh(gb[:, 2 * H:3 * H])
        hb = jax.nn.sigmoid(gb[:, 3 * H:4 * H]) * jnp.tanh(cb)

        # ---- forward LSTM recurrence, steps 1..T-1, fully unrolled (T small & static) ----
        whh_cp.wait()   # whh_buf landed while the projection / step 0 ran
        for t in range(1, T):
            g = xg_ref[t * Bp:(t + 1) * Bp, 0:4 * H] + jnp.dot(
                h.astype(jnp.bfloat16), whh_buf[...],
                preferred_element_type=jnp.float32)
            i_g = jax.nn.sigmoid(g[:, 0:H])
            f_g = jax.nn.sigmoid(g[:, H:2 * H])
            g_g = jnp.tanh(g[:, 2 * H:3 * H])
            o_g = jax.nn.sigmoid(g[:, 3 * H:4 * H])
            c = f_g * c + i_g * g_g
            h = o_g * jnp.tanh(c)

        # ---- fc1 (split rows, no concat) -> relu -> dropout(eval=identity) -> fc2 ----
        w1_cp.wait(); b1_cp.wait(); w2_cp.wait(); b2_cp.wait()
        z = (jnp.dot(h.astype(jnp.bfloat16), w1_buf[0:H, :],
                     preferred_element_type=jnp.float32)
             + jnp.dot(hb.astype(jnp.bfloat16), w1_buf[H:2 * H, :],
                       preferred_element_type=jnp.float32)
             + b1_buf[...])
        z = jnp.maximum(z, 0.0)
        out = jnp.dot(z.astype(jnp.bfloat16), w2_buf[...],
                      preferred_element_type=jnp.float32) + b2_buf[...]
        out_ref[...] = out.astype(out_ref.dtype)

    return kernel


def audio_classifier_pallas(x_btd, params):
    B, T, D = x_btd.shape
    Bp = ((B + SUBLANE - 1) // SUBLANE) * SUBLANE

    (wih_f, whh_f, b_f, wih_b, whh_b, b_b, w1, b1, w2, b2) = params
    del whh_b  # backward step starts from a zero state -> recurrent term vanishes

    # time-major, batch padded to a full sublane tile, flattened to (T*Bp, D)
    x_tbd = jnp.transpose(x_btd, (1, 0, 2)).astype(jnp.float32)
    if Bp != B:
        x_tbd = jnp.pad(x_tbd, ((0, 0), (0, Bp - B), (0, 0)))
    x2d = x_tbd.reshape(T * Bp, D)

    # fwd + bwd input projections fused into one (D, 8H) weight -> single hoisted matmul
    wih_cat = jnp.concatenate([wih_f, wih_b], axis=1).astype(jnp.bfloat16)   # (D, 8H)
    bg_cat = jnp.concatenate([b_f, b_b], axis=1).astype(jnp.float32)         # (1, 8H)

    # big matrices in bf16 (halves parameter HBM traffic; MXU-native), biases in f32
    whh_bf = whh_f.astype(jnp.bfloat16)                                       # (H, 4H)
    w1p = jnp.pad(w1, ((0, 0), (0, FC1_PAD - FC1_DIM))).astype(jnp.bfloat16)  # (2H, 128)
    b1p = jnp.pad(b1, ((0, 0), (0, FC1_PAD - FC1_DIM))).astype(jnp.float32)   # (1, 128)
    w2p = jnp.pad(w2, ((0, FC1_PAD - FC1_DIM),
                       (0, OUT_PAD - NUM_CLASSES))).astype(jnp.bfloat16)      # (128, 128)
    b2p = jnp.pad(b2, ((0, 0), (0, OUT_PAD - NUM_CLASSES))).astype(jnp.float32)

    full = lambda a: pl.BlockSpec(a.shape, lambda i: (0,) * a.ndim)
    anyspec = pl.BlockSpec(memory_space=pl.ANY)

    grid_spec = pltpu.PrefetchScalarGridSpec(
        num_scalar_prefetch=0,
        grid=(1,),   # single grid step: the whole recurrence is unrolled in-kernel
        in_specs=[
            full(x2d), full(wih_cat), full(bg_cat),       # needed by the first matmul
            anyspec, anyspec, anyspec, anyspec, anyspec,  # manual, overlapped DMAs
        ],
        out_specs=pl.BlockSpec((Bp, OUT_PAD), lambda i: (0, 0)),
        scratch_shapes=[
            pltpu.VMEM((T * Bp, 8 * HIDDEN), jnp.float32),     # xg (fwd+bwd gate pre-acts)
            pltpu.VMEM((HIDDEN, 4 * HIDDEN), jnp.bfloat16),    # whh landing buffer
            pltpu.VMEM((2 * HIDDEN, FC1_PAD), jnp.bfloat16),   # w1 landing buffer
            pltpu.VMEM((1, FC1_PAD), jnp.float32),             # b1 landing buffer
            pltpu.VMEM((FC1_PAD, OUT_PAD), jnp.bfloat16),      # w2 landing buffer
            pltpu.VMEM((1, OUT_PAD), jnp.float32),             # b2 landing buffer
            pltpu.SemaphoreType.DMA((5,)),
        ],
    )

    out = pl.pallas_call(
        _make_kernel(T, Bp, D),
        out_shape=jax.ShapeDtypeStruct((Bp, OUT_PAD), jnp.float32),
        grid_spec=grid_spec,
        compiler_params=pltpu.CompilerParams(
            dimension_semantics=("arbitrary",)),
    )(x2d, wih_cat, bg_cat, whh_bf, w1p, b1p, w2p, b2p)

    return out[:B, :NUM_CLASSES]


def make_params(key):
    """Deterministic synthetic parameters with the shapes implied by the module,
    stored transposed as (in, out). Biases are the folded b_ih + b_hh."""
    ks = jax.random.split(key, 10)
    s = 0.1
    wih_f = s * jax.random.normal(ks[0], (INPUT_SIZE, 4 * HIDDEN), jnp.float32)
    whh_f = s * jax.random.normal(ks[1], (HIDDEN, 4 * HIDDEN), jnp.float32)
    b_f = s * jax.random.normal(ks[2], (1, 4 * HIDDEN), jnp.float32)
    wih_b = s * jax.random.normal(ks[3], (INPUT_SIZE, 4 * HIDDEN), jnp.float32)
    whh_b = s * jax.random.normal(ks[4], (HIDDEN, 4 * HIDDEN), jnp.float32)
    b_b = s * jax.random.normal(ks[5], (1, 4 * HIDDEN), jnp.float32)
    w1 = s * jax.random.normal(ks[6], (2 * HIDDEN, FC1_DIM), jnp.float32)
    b1 = s * jax.random.normal(ks[7], (1, FC1_DIM), jnp.float32)
    w2 = s * jax.random.normal(ks[8], (FC1_DIM, NUM_CLASSES), jnp.float32)
    b2 = s * jax.random.normal(ks[9], (1, NUM_CLASSES), jnp.float32)
    return (wih_f, whh_f, b_f, wih_b, whh_b, b_b, w1, b1, w2, b2)


def reference_jax(x_btd, params):
    """Pure-JAX reference mirroring the PyTorch forward (eval mode).
    Big weight matrices are rounded through bf16 to mirror the kernel's weight dtype."""
    (wih_f, whh_f, b_f, wih_b, whh_b, b_b, w1, b1, w2, b2) = params
    q = lambda w: w.astype(jnp.bfloat16).astype(jnp.float32)
    wih_f, whh_f, wih_b, whh_b, w1, w2 = map(q, (wih_f, whh_f, wih_b, whh_b, w1, w2))
    B, T, D = x_btd.shape
    H = HIDDEN

    def lstm_step(carry, xt, wih, whh, b):
        h, c = carry
        g = xt @ wih + h @ whh + b
        i = jax.nn.sigmoid(g[:, 0:H])
        f = jax.nn.sigmoid(g[:, H:2 * H])
        gg = jnp.tanh(g[:, 2 * H:3 * H])
        o = jax.nn.sigmoid(g[:, 3 * H:4 * H])
        c = f * c + i * gg
        h = o * jnp.tanh(c)
        return (h, c), h

    x_tbd = jnp.transpose(x_btd, (1, 0, 2))
    init = (jnp.zeros((B, H), jnp.float32), jnp.zeros((B, H), jnp.float32))
    (hT, _), _ = jax.lax.scan(lambda cr, xt: lstm_step(cr, xt, wih_f, whh_f, b_f), init, x_tbd)
    # backward direction's output at index T-1: one step on x[T-1] from zeros.
    (hb, _), _ = lstm_step(init, x_tbd[-1], wih_b, whh_b, b_b)
    feat = jnp.concatenate([hT, hb], axis=-1)
    z = jnp.maximum(feat @ w1 + b1, 0.0)
    return z @ w2 + b2


if __name__ == "__main__":
    key = jax.random.PRNGKey(0)
    k_x, k_p = jax.random.split(key)

    B, T = 4, 8
    x = jax.random.normal(k_x, (B, T, INPUT_SIZE), jnp.float32)
    params = make_params(k_p)

    out = audio_classifier_pallas(x, params)
    out = jax.block_until_ready(out)

    ref = jax.block_until_ready(reference_jax(x, params))
    # bf16 weights/activation casts in the kernel -> compare at bf16-level tolerance.
    np.testing.assert_allclose(np.asarray(out), np.asarray(ref), rtol=2e-2, atol=2e-2)

    print("KERNEL_OK")
</pallas_src>

<mosaic_0001>
module attributes {stable_mosaic.version = 11 : i64} {
  func.func @kernel(%arg0: i32, %arg1: memref<64x40xf32, #tpu.memory_space<vmem>>, %arg2: memref<40x1024xbf16, #tpu.memory_space<vmem>>, %arg3: memref<1x1024xf32, #tpu.memory_space<vmem>>, %arg4: memref<128x512xbf16, #tpu.memory_space<any>>, %arg5: memref<256x128xbf16, #tpu.memory_space<any>>, %arg6: memref<1x128xf32, #tpu.memory_space<any>>, %arg7: memref<128x128xbf16, #tpu.memory_space<any>>, %arg8: memref<1x128xf32, #tpu.memory_space<any>>, %arg9: memref<8x128xf32, #tpu.memory_space<vmem>>, %arg10: memref<64x1024xf32, #tpu.memory_space<vmem>>, %arg11: memref<128x512xbf16, #tpu.memory_space<vmem>>, %arg12: memref<256x128xbf16, #tpu.memory_space<vmem>>, %arg13: memref<1x128xf32, #tpu.memory_space<vmem>>, %arg14: memref<128x128xbf16, #tpu.memory_space<vmem>>, %arg15: memref<1x128xf32, #tpu.memory_space<vmem>>, %arg16: memref<5x!tpu.dma_semaphore, #tpu.memory_space<semaphore_mem>>) attributes {dimension_semantics = [#tpu.dimension_semantics<arbitrary>], iteration_bounds = array<i64: 1>, scalar_prefetch = 0 : i64, scratch_operands = 7 : i64, tpu.core_type = #tpu.core_type<tc>, window_params = [{pipeline_mode = #tpu.pipeline_mode<synchronous>, transform_indices = @transform_0, window_bounds = array<i64: 64, 40>}, {pipeline_mode = #tpu.pipeline_mode<synchronous>, transform_indices = @transform_1, window_bounds = array<i64: 40, 1024>}, {pipeline_mode = #tpu.pipeline_mode<synchronous>, transform_indices = @transform_2, window_bounds = array<i64: 1, 1024>}, {}, {}, {}, {}, {}, {pipeline_mode = #tpu.pipeline_mode<synchronous>, transform_indices = @transform_8, window_bounds = array<i64: 8, 128>}]} {
    %c0_i32 = arith.constant 0 : i32
    %0 = tpu.memref_slice %arg16[%c0_i32] : memref<5x!tpu.dma_semaphore, #tpu.memory_space<semaphore_mem>> -> memref<1x!tpu.dma_semaphore, #tpu.memory_space<semaphore_mem>>
    %1 = tpu.memref_squeeze %0 : memref<1x!tpu.dma_semaphore, #tpu.memory_space<semaphore_mem>> -> memref<!tpu.dma_semaphore, #tpu.memory_space<semaphore_mem>>
    tpu.enqueue_dma source(%arg4 : memref<128x512xbf16, #tpu.memory_space<any>>) target(%arg11 : memref<128x512xbf16, #tpu.memory_space<vmem>>) target_semaphore(%1 : memref<!tpu.dma_semaphore, #tpu.memory_space<semaphore_mem>>)
    %c1_i32 = arith.constant 1 : i32
    %2 = tpu.memref_slice %arg16[%c1_i32] : memref<5x!tpu.dma_semaphore, #tpu.memory_space<semaphore_mem>> -> memref<1x!tpu.dma_semaphore, #tpu.memory_space<semaphore_mem>>
    %3 = tpu.memref_squeeze %2 : memref<1x!tpu.dma_semaphore, #tpu.memory_space<semaphore_mem>> -> memref<!tpu.dma_semaphore, #tpu.memory_space<semaphore_mem>>
    tpu.enqueue_dma source(%arg5 : memref<256x128xbf16, #tpu.memory_space<any>>) target(%arg12 : memref<256x128xbf16, #tpu.memory_space<vmem>>) target_semaphore(%3 : memref<!tpu.dma_semaphore, #tpu.memory_space<semaphore_mem>>)
    %c2_i32 = arith.constant 2 : i32
    %4 = tpu.memref_slice %arg16[%c2_i32] : memref<5x!tpu.dma_semaphore, #tpu.memory_space<semaphore_mem>> -> memref<1x!tpu.dma_semaphore, #tpu.memory_space<semaphore_mem>>
    %5 = tpu.memref_squeeze %4 : memref<1x!tpu.dma_semaphore, #tpu.memory_space<semaphore_mem>> -> memref<!tpu.dma_semaphore, #tpu.memory_space<semaphore_mem>>
    tpu.enqueue_dma source(%arg6 : memref<1x128xf32, #tpu.memory_space<any>>) target(%arg13 : memref<1x128xf32, #tpu.memory_space<vmem>>) target_semaphore(%5 : memref<!tpu.dma_semaphore, #tpu.memory_space<semaphore_mem>>)
    %c3_i32 = arith.constant 3 : i32
    %6 = tpu.memref_slice %arg16[%c3_i32] : memref<5x!tpu.dma_semaphore, #tpu.memory_space<semaphore_mem>> -> memref<1x!tpu.dma_semaphore, #tpu.memory_space<semaphore_mem>>
    %7 = tpu.memref_squeeze %6 : memref<1x!tpu.dma_semaphore, #tpu.memory_space<semaphore_mem>> -> memref<!tpu.dma_semaphore, #tpu.memory_space<semaphore_mem>>
    tpu.enqueue_dma source(%arg7 : memref<128x128xbf16, #tpu.memory_space<any>>) target(%arg14 : memref<128x128xbf16, #tpu.memory_space<vmem>>) target_semaphore(%7 : memref<!tpu.dma_semaphore, #tpu.memory_space<semaphore_mem>>)
    %c4_i32 = arith.constant 4 : i32
    %8 = tpu.memref_slice %arg16[%c4_i32] : memref<5x!tpu.dma_semaphore, #tpu.memory_space<semaphore_mem>> -> memref<1x!tpu.dma_semaphore, #tpu.memory_space<semaphore_mem>>
    %9 = tpu.memref_squeeze %8 : memref<1x!tpu.dma_semaphore, #tpu.memory_space<semaphore_mem>> -> memref<!tpu.dma_semaphore, #tpu.memory_space<semaphore_mem>>
    tpu.enqueue_dma source(%arg8 : memref<1x128xf32, #tpu.memory_space<any>>) target(%arg15 : memref<1x128xf32, #tpu.memory_space<vmem>>) target_semaphore(%9 : memref<!tpu.dma_semaphore, #tpu.memory_space<semaphore_mem>>)
    %c0 = arith.constant 0 : index
    %c0_0 = arith.constant 0 : index
    %10 = vector.load %arg1[%c0, %c0_0] : memref<64x40xf32, #tpu.memory_space<vmem>>, vector<64x40xf32>
    %11 = arith.truncf %10 : vector<64x40xf32> to vector<64x40xbf16>
    %c0_1 = arith.constant 0 : index
    %c0_2 = arith.constant 0 : index
    %12 = vector.load %arg2[%c0_1, %c0_2] : memref<40x1024xbf16, #tpu.memory_space<vmem>>, vector<40x1024xbf16>
    %cst = arith.constant dense<0.000000e+00> : vector<64x1024xf32>
    %13 = tpu.matmul %11, %12, %cst {dimension_numbers = #tpu.dot_dimension_numbers<[1], [0], [0], [1], [0, 0, 1, 1], [], []>} : vector<64x40xbf16>, vector<40x1024xbf16>, vector<64x1024xf32> -> vector<64x1024xf32>
    %c0_3 = arith.constant 0 : index
    %c0_4 = arith.constant 0 : index
    %14 = vector.load %arg3[%c0_3, %c0_4] : memref<1x1024xf32, #tpu.memory_space<vmem>>, vector<1x1024xf32>
    %15 = vector.broadcast %14 : vector<1x1024xf32> to vector<64x1024xf32>
    %16 = arith.addf %13, %15 : vector<64x1024xf32>
    %c0_5 = arith.constant 0 : index
    %c0_6 = arith.constant 0 : index
    %17 = vector.load %arg10[%c0_5, %c0_6] : memref<64x1024xf32, #tpu.memory_space<vmem>>, vector<64x1024xf32>
    tpu.vector_store %arg10[%c0_5, %c0_6], %16 {strides = array<i32>} : memref<64x1024xf32, #tpu.memory_space<vmem>>, vector<64x1024xf32>,
    %c0_7 = arith.constant 0 : index
    %c0_8 = arith.constant 0 : index
    %18 = vector.load %arg10[%c0_7, %c0_8] : memref<64x1024xf32, #tpu.memory_space<vmem>>, vector<8x512xf32>
    %19 = vector.extract_strided_slice %18 {offsets = [0, 0], sizes = [8, 128], strides = [1, 1]} : vector<8x512xf32> to vector<8x128xf32>
    %20 = arith.negf %19 : vector<8x128xf32>
    %21 = math.exp %20 : vector<8x128xf32>
    %cst_9 = arith.constant 1.000000e+00 : f32
    %22 = vector.broadcast %cst_9 : f32 to vector<8x128xf32>
    %23 = arith.addf %22, %21 : vector<8x128xf32>
    %24 = arith.divf %22, %23 : vector<8x128xf32>
    %25 = vector.extract_strided_slice %18 {offsets = [0, 256], sizes = [8, 128], strides = [1, 1]} : vector<8x512xf32> to vector<8x128xf32>
    %26 = math.tanh %25 : vector<8x128xf32>
    %27 = arith.mulf %24, %26 : vector<8x128xf32>
    %28 = vector.extract_strided_slice %18 {offsets = [0, 384], sizes = [8, 128], strides = [1, 1]} : vector<8x512xf32> to vector<8x128xf32>
    %29 = arith.negf %28 : vector<8x128xf32>
    %30 = math.exp %29 : vector<8x128xf32>
    %cst_10 = arith.constant 1.000000e+00 : f32
    %31 = vector.broadcast %cst_10 : f32 to vector<8x128xf32>
    %32 = arith.addf %31, %30 : vector<8x128xf32>
    %33 = arith.divf %31, %32 : vector<8x128xf32>
    %34 = math.tanh %27 : vector<8x128xf32>
    %35 = arith.mulf %33, %34 : vector<8x128xf32>
    %c56 = arith.constant 56 : index
    %c512 = arith.constant 512 : index
    %36 = vector.load %arg10[%c56, %c512] : memref<64x1024xf32, #tpu.memory_space<vmem>>, vector<8x512xf32>
    %37 = vector.extract_strided_slice %36 {offsets = [0, 0], sizes = [8, 128], strides = [1, 1]} : vector<8x512xf32> to vector<8x128xf32>
    %38 = arith.negf %37 : vector<8x128xf32>
    %39 = math.exp %38 : vector<8x128xf32>
    %cst_11 = arith.constant 1.000000e+00 : f32
    %40 = vector.broadcast %cst_11 : f32 to vector<8x128xf32>
    %41 = arith.addf %40, %39 : vector<8x128xf32>
    %42 = arith.divf %40, %41 : vector<8x128xf32>
    %43 = vector.extract_strided_slice %36 {offsets = [0, 256], sizes = [8, 128], strides = [1, 1]} : vector<8x512xf32> to vector<8x128xf32>
    %44 = math.tanh %43 : vector<8x128xf32>
    %45 = arith.mulf %42, %44 : vector<8x128xf32>
    %46 = vector.extract_strided_slice %36 {offsets = [0, 384], sizes = [8, 128], strides = [1, 1]} : vector<8x512xf32> to vector<8x128xf32>
    %47 = arith.negf %46 : vector<8x128xf32>
    %48 = math.exp %47 : vector<8x128xf32>
    %cst_12 = arith.constant 1.000000e+00 : f32
    %49 = vector.broadcast %cst_12 : f32 to vector<8x128xf32>
    %50 = arith.addf %49, %48 : vector<8x128xf32>
    %51 = arith.divf %49, %50 : vector<8x128xf32>
    %52 = math.tanh %45 : vector<8x128xf32>
    %53 = arith.mulf %51, %52 : vector<8x128xf32>
    %c0_i32_13 = arith.constant 0 : i32
    %54 = tpu.memref_slice %arg16[%c0_i32_13] : memref<5x!tpu.dma_semaphore, #tpu.memory_space<semaphore_mem>> -> memref<1x!tpu.dma_semaphore, #tpu.memory_space<semaphore_mem>>
    %55 = tpu.memref_squeeze %54 : memref<1x!tpu.dma_semaphore, #tpu.memory_space<semaphore_mem>> -> memref<!tpu.dma_semaphore, #tpu.memory_space<semaphore_mem>>
    tpu.wait_dma2 semaphore(%55 : memref<!tpu.dma_semaphore, #tpu.memory_space<semaphore_mem>>) src(%arg4 : memref<128x512xbf16, #tpu.memory_space<any>>) dst(%arg11 : memref<128x512xbf16, #tpu.memory_space<vmem>>)
    %c8 = arith.constant 8 : index
    %c0_14 = arith.constant 0 : index
    %56 = vector.load %arg10[%c8, %c0_14] : memref<64x1024xf32, #tpu.memory_space<vmem>>, vector<8x512xf32>
    %57 = arith.truncf %35 : vector<8x128xf32> to vector<8x128xbf16>
    %c0_15 = arith.constant 0 : index
    %c0_16 = arith.constant 0 : index
    %58 = vector.load %arg11[%c0_15, %c0_16] : memref<128x512xbf16, #tpu.memory_space<vmem>>, vector<128x512xbf16>
    %cst_17 = arith.constant dense<0.000000e+00> : vector<8x512xf32>
    %59 = tpu.matmul %57, %58, %cst_17 {dimension_numbers = #tpu.dot_dimension_numbers<[1], [0], [0], [1], [0, 0, 1, 1], [], []>} : vector<8x128xbf16>, vector<128x512xbf16>, vector<8x512xf32> -> vector<8x512xf32>
    %60 = arith.addf %56, %59 : vector<8x512xf32>
    %61 = vector.extract_strided_slice %60 {offsets = [0, 0], sizes = [8, 128], strides = [1, 1]} : vector<8x512xf32> to vector<8x128xf32>
    %62 = arith.negf %61 : vector<8x128xf32>
    %63 = math.exp %62 : vector<8x128xf32>
    %cst_18 = arith.constant 1.000000e+00 : f32
    %64 = vector.broadcast %cst_18 : f32 to vector<8x128xf32>
    %65 = arith.addf %64, %63 : vector<8x128xf32>
    %66 = arith.divf %64, %65 : vector<8x128xf32>
    %67 = vector.extract_strided_slice %60 {offsets = [0, 128], sizes = [8, 128], strides = [1, 1]} : vector<8x512xf32> to vector<8x128xf32>
    %68 = arith.negf %67 : vector<8x128xf32>
    %69 = math.exp %68 : vector<8x128xf32>
    %cst_19 = arith.constant 1.000000e+00 : f32
    %70 = vector.broadcast %cst_19 : f32 to vector<8x128xf32>
    %71 = arith.addf %70, %69 : vector<8x128xf32>
    %72 = arith.divf %70, %71 : vector<8x128xf32>
    %73 = vector.extract_strided_slice %60 {offsets = [0, 256], sizes = [8, 128], strides = [1, 1]} : vector<8x512xf32> to vector<8x128xf32>
    %74 = math.tanh %73 : vector<8x128xf32>
    %75 = vector.extract_strided_slice %60 {offsets = [0, 384], sizes = [8, 128], strides = [1, 1]} : vector<8x512xf32> to vector<8x128xf32>
    %76 = arith.negf %75 : vector<8x128xf32>
    %77 = math.exp %76 : vector<8x128xf32>
    %cst_20 = arith.constant 1.000000e+00 : f32
    %78 = vector.broadcast %cst_20 : f32 to vector<8x128xf32>
    %79 = arith.addf %78, %77 : vector<8x128xf32>
    %80 = arith.divf %78, %79 : vector<8x128xf32>
    %81 = arith.mulf %72, %27 : vector<8x128xf32>
    %82 = arith.mulf %66, %74 : vector<8x128xf32>
    %83 = arith.addf %81, %82 : vector<8x128xf32>
    %84 = math.tanh %83 : vector<8x128xf32>
    %85 = arith.mulf %80, %84 : vector<8x128xf32>
    %c16 = arith.constant 16 : index
    %c0_21 = arith.constant 0 : index
    %86 = vector.load %arg10[%c16, %c0_21] : memref<64x1024xf32, #tpu.memory_space<vmem>>, vector<8x512xf32>
    %87 = arith.truncf %85 : vector<8x128xf32> to vector<8x128xbf16>
    %c0_22 = arith.constant 0 : index
    %c0_23 = arith.constant 0 : index
    %88 = vector.load %arg11[%c0_22, %c0_23] : memref<128x512xbf16, #tpu.memory_space<vmem>>, vector<128x512xbf16>
    %cst_24 = arith.constant dense<0.000000e+00> : vector<8x512xf32>
    %89 = tpu.matmul %87, %88, %cst_24 {dimension_numbers = #tpu.dot_dimension_numbers<[1], [0], [0], [1], [0, 0, 1, 1], [], []>} : vector<8x128xbf16>, vector<128x512xbf16>, vector<8x512xf32> -> vector<8x512xf32>
    %90 = arith.addf %86, %89 : vector<8x512xf32>
    %91 = vector.extract_strided_slice %90 {offsets = [0, 0], sizes = [8, 128], strides = [1, 1]} : vector<8x512xf32> to vector<8x128xf32>
    %92 = arith.negf %91 : vector<8x128xf32>
    %93 = math.exp %92 : vector<8x128xf32>
    %cst_25 = arith.constant 1.000000e+00 : f32
    %94 = vector.broadcast %cst_25 : f32 to vector<8x128xf32>
    %95 = arith.addf %94, %93 : vector<8x128xf32>
    %96 = arith.divf %94, %95 : vector<8x128xf32>
    %97 = vector.extract_strided_slice %90 {offsets = [0, 128], sizes = [8, 128], strides = [1, 1]} : vector<8x512xf32> to vector<8x128xf32>
    %98 = arith.negf %97 : vector<8x128xf32>
    %99 = math.exp %98 : vector<8x128xf32>
    %cst_26 = arith.constant 1.000000e+00 : f32
    %100 = vector.broadcast %cst_26 : f32 to vector<8x128xf32>
    %101 = arith.addf %100, %99 : vector<8x128xf32>
    %102 = arith.divf %100, %101 : vector<8x128xf32>
    %103 = vector.extract_strided_slice %90 {offsets = [0, 256], sizes = [8, 128], strides = [1, 1]} : vector<8x512xf32> to vector<8x128xf32>
    %104 = math.tanh %103 : vector<8x128xf32>
    %105 = vector.extract_strided_slice %90 {offsets = [0, 384], sizes = [8, 128], strides = [1, 1]} : vector<8x512xf32> to vector<8x128xf32>
    %106 = arith.negf %105 : vector<8x128xf32>
    %107 = math.exp %106 : vector<8x128xf32>
    %cst_27 = arith.constant 1.000000e+00 : f32
    %108 = vector.broadcast %cst_27 : f32 to vector<8x128xf32>
    %109 = arith.addf %108, %107 : vector<8x128xf32>
    %110 = arith.divf %108, %109 : vector<8x128xf32>
    %111 = arith.mulf %102, %83 : vector<8x128xf32>
    %112 = arith.mulf %96, %104 : vector<8x128xf32>
    %113 = arith.addf %111, %112 : vector<8x128xf32>
    %114 = math.tanh %113 : vector<8x128xf32>
    %115 = arith.mulf %110, %114 : vector<8x128xf32>
    %c24 = arith.constant 24 : index
    %c0_28 = arith.constant 0 : index
    %116 = vector.load %arg10[%c24, %c0_28] : memref<64x1024xf32, #tpu.memory_space<vmem>>, vector<8x512xf32>
    %117 = arith.truncf %115 : vector<8x128xf32> to vector<8x128xbf16>
    %c0_29 = arith.constant 0 : index
    %c0_30 = arith.constant 0 : index
    %118 = vector.load %arg11[%c0_29, %c0_30] : memref<128x512xbf16, #tpu.memory_space<vmem>>, vector<128x512xbf16>
    %cst_31 = arith.constant dense<0.000000e+00> : vector<8x512xf32>
    %119 = tpu.matmul %117, %118, %cst_31 {dimension_numbers = #tpu.dot_dimension_numbers<[1], [0], [0], [1], [0, 0, 1, 1], [], []>} : vector<8x128xbf16>, vector<128x512xbf16>, vector<8x512xf32> -> vector<8x512xf32>
    %120 = arith.addf %116, %119 : vector<8x512xf32>
    %121 = vector.extract_strided_slice %120 {offsets = [0, 0], sizes = [8, 128], strides = [1, 1]} : vector<8x512xf32> to vector<8x128xf32>
    %122 = arith.negf %121 : vector<8x128xf32>
    %123 = math.exp %122 : vector<8x128xf32>
    %cst_32 = arith.constant 1.000000e+00 : f32
    %124 = vector.broadcast %cst_32 : f32 to vector<8x128xf32>
    %125 = arith.addf %124, %123 : vector<8x128xf32>
    %126 = arith.divf %124, %125 : vector<8x128xf32>
    %127 = vector.extract_strided_slice %120 {offsets = [0, 128], sizes = [8, 128], strides = [1, 1]} : vector<8x512xf32> to vector<8x128xf32>
    %128 = arith.negf %127 : vector<8x128xf32>
    %129 = math.exp %128 : vector<8x128xf32>
    %cst_33 = arith.constant 1.000000e+00 : f32
    %130 = vector.broadcast %cst_33 : f32 to vector<8x128xf32>
    %131 = arith.addf %130, %129 : vector<8x128xf32>
    %132 = arith.divf %130, %131 : vector<8x128xf32>
    %133 = vector.extract_strided_slice %120 {offsets = [0, 256], sizes = [8, 128], strides = [1, 1]} : vector<8x512xf32> to vector<8x128xf32>
    %134 = math.tanh %133 : vector<8x128xf32>
    %135 = vector.extract_strided_slice %120 {offsets = [0, 384], sizes = [8, 128], strides = [1, 1]} : vector<8x512xf32> to vector<8x128xf32>
    %136 = arith.negf %135 : vector<8x128xf32>
    %137 = math.exp %136 : vector<8x128xf32>
    %cst_34 = arith.constant 1.000000e+00 : f32
    %138 = vector.broadcast %cst_34 : f32 to vector<8x128xf32>
    %139 = arith.addf %138, %137 : vector<8x128xf32>
    %140 = arith.divf %138, %139 : vector<8x128xf32>
    %141 = arith.mulf %132, %113 : vector<8x128xf32>
    %142 = arith.mulf %126, %134 : vector<8x128xf32>
    %143 = arith.addf %141, %142 : vector<8x128xf32>
    %144 = math.tanh %143 : vector<8x128xf32>
    %145 = arith.mulf %140, %144 : vector<8x128xf32>
    %c32 = arith.constant 32 : index
    %c0_35 = arith.constant 0 : index
    %146 = vector.load %arg10[%c32, %c0_35] : memref<64x1024xf32, #tpu.memory_space<vmem>>, vector<8x512xf32>
    %147 = arith.truncf %145 : vector<8x128xf32> to vector<8x128xbf16>
    %c0_36 = arith.constant 0 : index
    %c0_37 = arith.constant 0 : index
    %148 = vector.load %arg11[%c0_36, %c0_37] : memref<128x512xbf16, #tpu.memory_space<vmem>>, vector<128x512xbf16>
    %cst_38 = arith.constant dense<0.000000e+00> : vector<8x512xf32>
    %149 = tpu.matmul %147, %148, %cst_38 {dimension_numbers = #tpu.dot_dimension_numbers<[1], [0], [0], [1], [0, 0, 1, 1], [], []>} : vector<8x128xbf16>, vector<128x512xbf16>, vector<8x512xf32> -> vector<8x512xf32>
    %150 = arith.addf %146, %149 : vector<8x512xf32>
    %151 = vector.extract_strided_slice %150 {offsets = [0, 0], sizes = [8, 128], strides = [1, 1]} : vector<8x512xf32> to vector<8x128xf32>
    %152 = arith.negf %151 : vector<8x128xf32>
    %153 = math.exp %152 : vector<8x128xf32>
    %cst_39 = arith.constant 1.000000e+00 : f32
    %154 = vector.broadcast %cst_39 : f32 to vector<8x128xf32>
    %155 = arith.addf %154, %153 : vector<8x128xf32>
    %156 = arith.divf %154, %155 : vector<8x128xf32>
    %157 = vector.extract_strided_slice %150 {offsets = [0, 128], sizes = [8, 128], strides = [1, 1]} : vector<8x512xf32> to vector<8x128xf32>
    %158 = arith.negf %157 : vector<8x128xf32>
    %159 = math.exp %158 : vector<8x128xf32>
    %cst_40 = arith.constant 1.000000e+00 : f32
    %160 = vector.broadcast %cst_40 : f32 to vector<8x128xf32>
    %161 = arith.addf %160, %159 : vector<8x128xf32>
    %162 = arith.divf %160, %161 : vector<8x128xf32>
    %163 = vector.extract_strided_slice %150 {offsets = [0, 256], sizes = [8, 128], strides = [1, 1]} : vector<8x512xf32> to vector<8x128xf32>
    %164 = math.tanh %163 : vector<8x128xf32>
    %165 = vector.extract_strided_slice %150 {offsets = [0, 384], sizes = [8, 128], strides = [1, 1]} : vector<8x512xf32> to vector<8x128xf32>
    %166 = arith.negf %165 : vector<8x128xf32>
    %167 = math.exp %166 : vector<8x128xf32>
    %cst_41 = arith.constant 1.000000e+00 : f32
    %168 = vector.broadcast %cst_41 : f32 to vector<8x128xf32>
    %169 = arith.addf %168, %167 : vector<8x128xf32>
    %170 = arith.divf %168, %169 : vector<8x128xf32>
    %171 = arith.mulf %162, %143 : vector<8x128xf32>
    %172 = arith.mulf %156, %164 : vector<8x128xf32>
    %173 = arith.addf %171, %172 : vector<8x128xf32>
    %174 = math.tanh %173 : vector<8x128xf32>
    %175 = arith.mulf %170, %174 : vector<8x128xf32>
    %c40 = arith.constant 40 : index
    %c0_42 = arith.constant 0 : index
    %176 = vector.load %arg10[%c40, %c0_42] : memref<64x1024xf32, #tpu.memory_space<vmem>>, vector<8x512xf32>
    %177 = arith.truncf %175 : vector<8x128xf32> to vector<8x128xbf16>
    %c0_43 = arith.constant 0 : index
    %c0_44 = arith.constant 0 : index
    %178 = vector.load %arg11[%c0_43, %c0_44] : memref<128x512xbf16, #tpu.memory_space<vmem>>, vector<128x512xbf16>
    %cst_45 = arith.constant dense<0.000000e+00> : vector<8x512xf32>
    %179 = tpu.matmul %177, %178, %cst_45 {dimension_numbers = #tpu.dot_dimension_numbers<[1], [0], [0], [1], [0, 0, 1, 1], [], []>} : vector<8x128xbf16>, vector<128x512xbf16>, vector<8x512xf32> -> vector<8x512xf32>
    %180 = arith.addf %176, %179 : vector<8x512xf32>
    %181 = vector.extract_strided_slice %180 {offsets = [0, 0], sizes = [8, 128], strides = [1, 1]} : vector<8x512xf32> to vector<8x128xf32>
    %182 = arith.negf %181 : vector<8x128xf32>
    %183 = math.exp %182 : vector<8x128xf32>
    %cst_46 = arith.constant 1.000000e+00 : f32
    %184 = vector.broadcast %cst_46 : f32 to vector<8x128xf32>
    %185 = arith.addf %184, %183 : vector<8x128xf32>
    %186 = arith.divf %184, %185 : vector<8x128xf32>
    %187 = vector.extract_strided_slice %180 {offsets = [0, 128], sizes = [8, 128], strides = [1, 1]} : vector<8x512xf32> to vector<8x128xf32>
    %188 = arith.negf %187 : vector<8x128xf32>
    %189 = math.exp %188 : vector<8x128xf32>
    %cst_47 = arith.constant 1.000000e+00 : f32
    %190 = vector.broadcast %cst_47 : f32 to vector<8x128xf32>
    %191 = arith.addf %190, %189 : vector<8x128xf32>
    %192 = arith.divf %190, %191 : vector<8x128xf32>
    %193 = vector.extract_strided_slice %180 {offsets = [0, 256], sizes = [8, 128], strides = [1, 1]} : vector<8x512xf32> to vector<8x128xf32>
    %194 = math.tanh %193 : vector<8x128xf32>
    %195 = vector.extract_strided_slice %180 {offsets = [0, 384], sizes = [8, 128], strides = [1, 1]} : vector<8x512xf32> to vector<8x128xf32>
    %196 = arith.negf %195 : vector<8x128xf32>
    %197 = math.exp %196 : vector<8x128xf32>
    %cst_48 = arith.constant 1.000000e+00 : f32
    %198 = vector.broadcast %cst_48 : f32 to vector<8x128xf32>
    %199 = arith.addf %198, %197 : vector<8x128xf32>
    %200 = arith.divf %198, %199 : vector<8x128xf32>
    %201 = arith.mulf %192, %173 : vector<8x128xf32>
    %202 = arith.mulf %186, %194 : vector<8x128xf32>
    %203 = arith.addf %201, %202 : vector<8x128xf32>
    %204 = math.tanh %203 : vector<8x128xf32>
    %205 = arith.mulf %200, %204 : vector<8x128xf32>
    %c48 = arith.constant 48 : index
    %c0_49 = arith.constant 0 : index
    %206 = vector.load %arg10[%c48, %c0_49] : memref<64x1024xf32, #tpu.memory_space<vmem>>, vector<8x512xf32>
    %207 = arith.truncf %205 : vector<8x128xf32> to vector<8x128xbf16>
    %c0_50 = arith.constant 0 : index
    %c0_51 = arith.constant 0 : index
    %208 = vector.load %arg11[%c0_50, %c0_51] : memref<128x512xbf16, #tpu.memory_space<vmem>>, vector<128x512xbf16>
    %cst_52 = arith.constant dense<0.000000e+00> : vector<8x512xf32>
    %209 = tpu.matmul %207, %208, %cst_52 {dimension_numbers = #tpu.dot_dimension_numbers<[1], [0], [0], [1], [0, 0, 1, 1], [], []>} : vector<8x128xbf16>, vector<128x512xbf16>, vector<8x512xf32> -> vector<8x512xf32>
    %210 = arith.addf %206, %209 : vector<8x512xf32>
    %211 = vector.extract_strided_slice %210 {offsets = [0, 0], sizes = [8, 128], strides = [1, 1]} : vector<8x512xf32> to vector<8x128xf32>
    %212 = arith.negf %211 : vector<8x128xf32>
    %213 = math.exp %212 : vector<8x128xf32>
    %cst_53 = arith.constant 1.000000e+00 : f32
    %214 = vector.broadcast %cst_53 : f32 to vector<8x128xf32>
    %215 = arith.addf %214, %213 : vector<8x128xf32>
    %216 = arith.divf %214, %215 : vector<8x128xf32>
    %217 = vector.extract_strided_slice %210 {offsets = [0, 128], sizes = [8, 128], strides = [1, 1]} : vector<8x512xf32> to vector<8x128xf32>
    %218 = arith.negf %217 : vector<8x128xf32>
    %219 = math.exp %218 : vector<8x128xf32>
    %cst_54 = arith.constant 1.000000e+00 : f32
    %220 = vector.broadcast %cst_54 : f32 to vector<8x128xf32>
    %221 = arith.addf %220, %219 : vector<8x128xf32>
    %222 = arith.divf %220, %221 : vector<8x128xf32>
    %223 = vector.extract_strided_slice %210 {offsets = [0, 256], sizes = [8, 128], strides = [1, 1]} : vector<8x512xf32> to vector<8x128xf32>
    %224 = math.tanh %223 : vector<8x128xf32>
    %225 = vector.extract_strided_slice %210 {offsets = [0, 384], sizes = [8, 128], strides = [1, 1]} : vector<8x512xf32> to vector<8x128xf32>
    %226 = arith.negf %225 : vector<8x128xf32>
    %227 = math.exp %226 : vector<8x128xf32>
    %cst_55 = arith.constant 1.000000e+00 : f32
    %228 = vector.broadcast %cst_55 : f32 to vector<8x128xf32>
    %229 = arith.addf %228, %227 : vector<8x128xf32>
    %230 = arith.divf %228, %229 : vector<8x128xf32>
    %231 = arith.mulf %222, %203 : vector<8x128xf32>
    %232 = arith.mulf %216, %224 : vector<8x128xf32>
    %233 = arith.addf %231, %232 : vector<8x128xf32>
    %234 = math.tanh %233 : vector<8x128xf32>
    %235 = arith.mulf %230, %234 : vector<8x128xf32>
    %c56_56 = arith.constant 56 : index
    %c0_57 = arith.constant 0 : index
    %236 = vector.load %arg10[%c56_56, %c0_57] : memref<64x1024xf32, #tpu.memory_space<vmem>>, vector<8x512xf32>
    %237 = arith.truncf %235 : vector<8x128xf32> to vector<8x128xbf16>
    %c0_58 = arith.constant 0 : index
    %c0_59 = arith.constant 0 : index
    %238 = vector.load %arg11[%c0_58, %c0_59] : memref<128x512xbf16, #tpu.memory_space<vmem>>, vector<128x512xbf16>
    %cst_60 = arith.constant dense<0.000000e+00> : vector<8x512xf32>
    %239 = tpu.matmul %237, %238, %cst_60 {dimension_numbers = #tpu.dot_dimension_numbers<[1], [0], [0], [1], [0, 0, 1, 1], [], []>} : vector<8x128xbf16>, vector<128x512xbf16>, vector<8x512xf32> -> vector<8x512xf32>
    %240 = arith.addf %236, %239 : vector<8x512xf32>
    %241 = vector.extract_strided_slice %240 {offsets = [0, 0], sizes = [8, 128], strides = [1, 1]} : vector<8x512xf32> to vector<8x128xf32>
    %242 = arith.negf %241 : vector<8x128xf32>
    %243 = math.exp %242 : vector<8x128xf32>
    %cst_61 = arith.constant 1.000000e+00 : f32
    %244 = vector.broadcast %cst_61 : f32 to vector<8x128xf32>
    %245 = arith.addf %244, %243 : vector<8x128xf32>
    %246 = arith.divf %244, %245 : vector<8x128xf32>
    %247 = vector.extract_strided_slice %240 {offsets = [0, 128], sizes = [8, 128], strides = [1, 1]} : vector<8x512xf32> to vector<8x128xf32>
    %248 = arith.negf %247 : vector<8x128xf32>
    %249 = math.exp %248 : vector<8x128xf32>
    %cst_62 = arith.constant 1.000000e+00 : f32
    %250 = vector.broadcast %cst_62 : f32 to vector<8x128xf32>
    %251 = arith.addf %250, %249 : vector<8x128xf32>
    %252 = arith.divf %250, %251 : vector<8x128xf32>
    %253 = vector.extract_strided_slice %240 {offsets = [0, 256], sizes = [8, 128], strides = [1, 1]} : vector<8x512xf32> to vector<8x128xf32>
    %254 = math.tanh %253 : vector<8x128xf32>
    %255 = vector.extract_strided_slice %240 {offsets = [0, 384], sizes = [8, 128], strides = [1, 1]} : vector<8x512xf32> to vector<8x128xf32>
    %256 = arith.negf %255 : vector<8x128xf32>
    %257 = math.exp %256 : vector<8x128xf32>
    %cst_63 = arith.constant 1.000000e+00 : f32
    %258 = vector.broadcast %cst_63 : f32 to vector<8x128xf32>
    %259 = arith.addf %258, %257 : vector<8x128xf32>
    %260 = arith.divf %258, %259 : vector<8x128xf32>
    %261 = arith.mulf %252, %233 : vector<8x128xf32>
    %262 = arith.mulf %246, %254 : vector<8x128xf32>
    %263 = arith.addf %261, %262 : vector<8x128xf32>
    %264 = math.tanh %263 : vector<8x128xf32>
    %265 = arith.mulf %260, %264 : vector<8x128xf32>
    %c1_i32_64 = arith.constant 1 : i32
    %266 = tpu.memref_slice %arg16[%c1_i32_64] : memref<5x!tpu.dma_semaphore, #tpu.memory_space<semaphore_mem>> -> memref<1x!tpu.dma_semaphore, #tpu.memory_space<semaphore_mem>>
    %267 = tpu.memref_squeeze %266 : memref<1x!tpu.dma_semaphore, #tpu.memory_space<semaphore_mem>> -> memref<!tpu.dma_semaphore, #tpu.memory_space<semaphore_mem>>
    tpu.wait_dma2 semaphore(%267 : memref<!tpu.dma_semaphore, #tpu.memory_space<semaphore_mem>>) src(%arg5 : memref<256x128xbf16, #tpu.memory_space<any>>) dst(%arg12 : memref<256x128xbf16, #tpu.memory_space<vmem>>)
    %c2_i32_65 = arith.constant 2 : i32
    %268 = tpu.memref_slice %arg16[%c2_i32_65] : memref<5x!tpu.dma_semaphore, #tpu.memory_space<semaphore_mem>> -> memref<1x!tpu.dma_semaphore, #tpu.memory_space<semaphore_mem>>
    %269 = tpu.memref_squeeze %268 : memref<1x!tpu.dma_semaphore, #tpu.memory_space<semaphore_mem>> -> memref<!tpu.dma_semaphore, #tpu.memory_space<semaphore_mem>>
    tpu.wait_dma2 semaphore(%269 : memref<!tpu.dma_semaphore, #tpu.memory_space<semaphore_mem>>) src(%arg6 : memref<1x128xf32, #tpu.memory_space<any>>) dst(%arg13 : memref<1x128xf32, #tpu.memory_space<vmem>>)
    %c3_i32_66 = arith.constant 3 : i32
    %270 = tpu.memref_slice %arg16[%c3_i32_66] : memref<5x!tpu.dma_semaphore, #tpu.memory_space<semaphore_mem>> -> memref<1x!tpu.dma_semaphore, #tpu.memory_space<semaphore_mem>>
    %271 = tpu.memref_squeeze %270 : memref<1x!tpu.dma_semaphore, #tpu.memory_space<semaphore_mem>> -> memref<!tpu.dma_semaphore, #tpu.memory_space<semaphore_mem>>
    tpu.wait_dma2 semaphore(%271 : memref<!tpu.dma_semaphore, #tpu.memory_space<semaphore_mem>>) src(%arg7 : memref<128x128xbf16, #tpu.memory_space<any>>) dst(%arg14 : memref<128x128xbf16, #tpu.memory_space<vmem>>)
    %c4_i32_67 = arith.constant 4 : i32
    %272 = tpu.memref_slice %arg16[%c4_i32_67] : memref<5x!tpu.dma_semaphore, #tpu.memory_space<semaphore_mem>> -> memref<1x!tpu.dma_semaphore, #tpu.memory_space<semaphore_mem>>
    %273 = tpu.memref_squeeze %272 : memref<1x!tpu.dma_semaphore, #tpu.memory_space<semaphore_mem>> -> memref<!tpu.dma_semaphore, #tpu.memory_space<semaphore_mem>>
    tpu.wait_dma2 semaphore(%273 : memref<!tpu.dma_semaphore, #tpu.memory_space<semaphore_mem>>) src(%arg8 : memref<1x128xf32, #tpu.memory_space<any>>) dst(%arg15 : memref<1x128xf32, #tpu.memory_space<vmem>>)
    %274 = arith.truncf %265 : vector<8x128xf32> to vector<8x128xbf16>
    %c0_68 = arith.constant 0 : index
    %c0_69 = arith.constant 0 : index
    %275 = vector.load %arg12[%c0_68, %c0_69] : memref<256x128xbf16, #tpu.memory_space<vmem>>, vector<128x128xbf16>
    %cst_70 = arith.constant dense<0.000000e+00> : vector<8x128xf32>
    %276 = tpu.matmul %274, %275, %cst_70 {dimension_numbers = #tpu.dot_dimension_numbers<[1], [0], [0], [1], [0, 0, 1, 1], [], []>} : vector<8x128xbf16>, vector<128x128xbf16>, vector<8x128xf32> -> vector<8x128xf32>
    %277 = arith.truncf %53 : vector<8x128xf32> to vector<8x128xbf16>
    %c128 = arith.constant 128 : index
    %c0_71 = arith.constant 0 : index
    %278 = vector.load %arg12[%c128, %c0_71] : memref<256x128xbf16, #tpu.memory_space<vmem>>, vector<128x128xbf16>
    %cst_72 = arith.constant dense<0.000000e+00> : vector<8x128xf32>
    %279 = tpu.matmul %277, %278, %cst_72 {dimension_numbers = #tpu.dot_dimension_numbers<[1], [0], [0], [1], [0, 0, 1, 1], [], []>} : vector<8x128xbf16>, vector<128x128xbf16>, vector<8x128xf32> -> vector<8x128xf32>
    %280 = arith.addf %276, %279 : vector<8x128xf32>
    %c0_73 = arith.constant 0 : index
    %c0_74 = arith.constant 0 : index
    %281 = vector.load %arg13[%c0_73, %c0_74] : memref<1x128xf32, #tpu.memory_space<vmem>>, vector<1x128xf32>
    %282 = vector.broadcast %281 : vector<1x128xf32> to vector<8x128xf32>
    %283 = arith.addf %280, %282 : vector<8x128xf32>
    %cst_75 = arith.constant 0.000000e+00 : f32
    %284 = vector.broadcast %cst_75 : f32 to vector<8x128xf32>
    %285 = arith.maximumf %283, %284 : vector<8x128xf32>
    %286 = arith.truncf %285 : vector<8x128xf32> to vector<8x128xbf16>
    %c0_76 = arith.constant 0 : index
    %c0_77 = arith.constant 0 : index
    %287 = vector.load %arg14[%c0_76, %c0_77] : memref<128x128xbf16, #tpu.memory_space<vmem>>, vector<128x128xbf16>
    %cst_78 = arith.constant dense<0.000000e+00> : vector<8x128xf32>
    %288 = tpu.matmul %286, %287, %cst_78 {dimension_numbers = #tpu.dot_dimension_numbers<[1], [0], [0], [1], [0, 0, 1, 1], [], []>} : vector<8x128xbf16>, vector<128x128xbf16>, vector<8x128xf32> -> vector<8x128xf32>
    %c0_79 = arith.constant 0 : index
    %c0_80 = arith.constant 0 : index
    %289 = vector.load %arg15[%c0_79, %c0_80] : memref<1x128xf32, #tpu.memory_space<vmem>>, vector<1x128xf32>
    %290 = vector.broadcast %289 : vector<1x128xf32> to vector<8x128xf32>
    %291 = arith.addf %288, %290 : vector<8x128xf32>
    %c0_81 = arith.constant 0 : index
    %c0_82 = arith.constant 0 : index
    %292 = vector.load %arg9[%c0_81, %c0_82] : memref<8x128xf32, #tpu.memory_space<vmem>>, vector<8x128xf32>
    tpu.vector_store %arg9[%c0_81, %c0_82], %291 {strides = array<i32>} : memref<8x128xf32, #tpu.memory_space<vmem>>, vector<8x128xf32>,
    return
  }
  func.func @transform_0(%arg0: i32) -> (i32, i32) {
    %c0_i32 = arith.constant 0 : i32
    %c0_i32_0 = arith.constant 0 : i32
    %c0_i32_1 = arith.constant 0 : i32
    return %c0_i32, %c0_i32_0 : i32, i32
  }
  func.func @transform_1(%arg0: i32) -> (i32, i32) {
    %c0_i32 = arith.constant 0 : i32
    %c0_i32_0 = arith.constant 0 : i32
    %c0_i32_1 = arith.constant 0 : i32
    return %c0_i32, %c0_i32_0 : i32, i32
  }
  func.func @transform_2(%arg0: i32) -> (i32, i32) {
    %c0_i32 = arith.constant 0 : i32
    %c0_i32_0 = arith.constant 0 : i32
    %c0_i32_1 = arith.constant 0 : i32
    return %c0_i32, %c0_i32_0 : i32, i32
  }
  func.func @transform_8(%arg0: i32) -> (i32, i32) {
    %c0_i32 = arith.constant 0 : i32
    %c0_i32_0 = arith.constant 0 : i32
    %c0_i32_1 = arith.constant 0 : i32
    return %c0_i32, %c0_i32_0 : i32, i32
  }
}

</mosaic_0001>

<bundles_post_ra>
// kernel: tpu_custom_call.1
= control target key start
LH: loop header
LB: loop body
LE: loop exit
PB: predicated region body
PF: predicated region fallthrough
CT: control target
= control target key end

     0   :  { %13 = vsyncpa [#allocation10], 0  ;;  %s3448_s0 = inlined_call_operand.vmem [shape: f32[64,40], index: 0, kind: input, shape index: {}]   ;;  %s3449_s1 = inlined_call_operand.hbm [shape: bf16[40,1024], index: 1, kind: input, shape index: {}]   ;;  %s3450_s2 = inlined_call_operand.vmem [shape: f32[1,1024], index: 2, kind: input, shape index: {}]   ;;  %s3451_s3 = inlined_call_operand.hbm [shape: bf16[128,512], index: 3, kind: input, shape index: {}]   ;;  %s3452_s4 = inlined_call_operand.hbm [shape: bf16[256,128], index: 4, kind: input, shape index: {}]   ;;  %s3453_s5 = inlined_call_operand.vmem [shape: f32[1,128], index: 5, kind: input, shape index: {}]   ;;  %s3454_s6 = inlined_call_operand.vmem [shape: bf16[128,128], index: 6, kind: input, shape index: {}]   ;;  %s3455_s7 = inlined_call_operand.vmem [shape: f32[1,128], index: 7, kind: input, shape index: {}]   ;;  %s3456_s8 = inlined_call_operand.hbm [shape: f32[8,128], index: 8, kind: output, shape index: {}]  }
   0x1   :  { %14 = vsyncpa [#allocation11], 0  ;;  %s2782_s27 = smov [#allocation9]  }
   0x2   :  { %s22_s28 = sshll.u32 %s2782_s27, 4  ;;  %s23_s28 = int_to_ptr.vmem [resolvable:$true] %s22_s28 }
   0x3   :  { %s2696_s29 = scalar_lea.vmem %s23_s28, 2560  ;;  %p2701_p1 = scmp.lt.s32.totalorder %s23_s28, %s23_s28 }
   0x4   :  { %p2697_p0 = scmp.ne.s32.totalorder %s23_s28, %s2696_s29  ;;  %p2702_p2 = scmp.lt.s32.totalorder %s2696_s29, %s2696_s29 }
   0x6   :  { %p2703_p3 = por %p2702_p2, %p2701_p1 }
   0x8   :  { %p2704_p4 = pnand %p2703_p3, %p2697_p0 }
   0xa   :  { %2707 = shalt.err (!%p2704_p4)
}
   0xb   :  { %s2783_s30 = smov 512   ;;  %s2784_s9 = smov 32  }
   0xc   :  { %28 = dma.hbm_to_vmem [thread:$0]  %s3449_s1, 2560, %s23_s28, [#allocation10], %s2783_s30, %s2783_s30, %s2784_s9  }
   0xd   :  { %2768 = dma.done.wait [#allocation10], 2560  }
   0xe   :  { %2769 = vsyncadd [#allocation10], 4294964736  ;;  %s2785_s12 = smov [#allocation3]   ;;  %s2786_s14 = smov [#allocation4]  }
   0xf   :  { %s42_s13 = sshll.u32 %s2785_s12, 4  ;;  %s54_s15 = sshll.u32 %s2786_s14, 4  ;;  %s43_s13 = int_to_ptr.vmem [resolvable:$true] %s42_s13  ;;  %s55_s15 = int_to_ptr.vmem [resolvable:$true] %s54_s15 }
  0x10   :  { %s2716_s16 = scalar_lea.vmem %s43_s13, 4096  ;;  %p2721_p6 = scmp.lt.s32.totalorder %s43_s13, %s43_s13 }
  0x11   :  { %p2717_p5 = scmp.ne.s32.totalorder %s43_s13, %s2716_s16  ;;  %p2722_p7 = scmp.lt.s32.totalorder %s2716_s16, %s2716_s16 }
  0x13   :  { %p2723_p8 = por %p2722_p7, %p2721_p6 }
  0x15   :  { %p2724_p9 = pnand %p2723_p8, %p2717_p5 }
  0x17   :  { %2727 = shalt.err (!%p2724_p9)  }
  0x18   :  { %45 = dma.hbm_to_vmem [thread:$0]  %s3451_s3, 4096, %s43_s13, [#allocation8] }
  0x19   :  { %s2736_s1 = scalar_lea.vmem %s55_s15, 2048  ;;  %p2741_p11 = scmp.lt.s32.totalorder %s55_s15, %s55_s15 }
  0x1a   :  { %p2737_p10 = scmp.ne.s32.totalorder %s55_s15, %s2736_s1  ;;  %p2742_p12 = scmp.lt.s32.totalorder %s2736_s1, %s2736_s1 }
  0x1c   :  { %p2743_p13 = por %p2742_p12, %p2741_p11 }
  0x1e   :  { %p2744_p0 = pnand %p2743_p13, %p2737_p10 }
  0x20   :  { %2747 = shalt.err (!%p2744_p0)  }
  0x21   :  { %57 = dma.hbm_to_vmem [thread:$0]  %s3452_s4, 2048, %s55_s15, [#allocation8 + $0x1]  ;;  %v77_v0 = vld [vmem:[%s3453_s5] sm:$0x1] }
  0x22   :  { %78 = vst [vmem:[#allocation5] sm:$0x1] %v77_v0 }
  0x23   :  { %104 = vsyncadd [#allocation8 + $0x2], 16  ;;  %v139_v1 = vld [vmem:[%s3454_s6] sm:$0xff]  ;;  %v141_v2 = vld [vmem:[%s3454_s6 + $0x8] sm:$0xff] }
  0x24   :  { %140 = vst [vmem:[#allocation6] sm:$0xff] %v139_v1  ;;  %142 = vst [vmem:[#allocation6 + $0x8] sm:$0xff] %v141_v2  ;;  %v143_v3 = vld [vmem:[%s3454_s6 + $0x10] sm:$0xff]  ;;  %v145_v4 = vld [vmem:[%s3454_s6 + $0x18] sm:$0xff] }
  0x25   :  { %v147_v5 = vld [vmem:[%s3454_s6 + $0x20] sm:$0xff]  ;;  %144 = vst [vmem:[#allocation6 + $0x10] sm:$0xff] %v143_v3  ;;  %146 = vst [vmem:[#allocation6 + $0x18] sm:$0xff] %v145_v4  ;;  %v149_v6 = vld [vmem:[%s3454_s6 + $0x28] sm:$0xff] }
  0x26   :  { %148 = vst [vmem:[#allocation6 + $0x20] sm:$0xff] %v147_v5  ;;  %v151_v7 = vld [vmem:[%s3454_s6 + $0x30] sm:$0xff]  ;;  %v153_v8 = vld [vmem:[%s3454_s6 + $0x38] sm:$0xff]  ;;  %150 = vst [vmem:[#allocation6 + $0x28] sm:$0xff] %v149_v6 }
  0x27   :  { %152 = vst [vmem:[#allocation6 + $0x30] sm:$0xff] %v151_v7  ;;  %154 = vst [vmem:[#allocation6 + $0x38] sm:$0xff] %v153_v8 }
  0x28   :  { %162 = vsyncadd [#allocation8 + $0x3], 1024  ;;  %v182_v9 = vld [vmem:[%s3455_s7] sm:$0x1] }
  0x29   :  { %183 = vst [vmem:[#allocation7] sm:$0x1] %v182_v9 }
  0x2a   :  { %209 = vsyncadd [#allocation8 + $0x4], 16  ;;  %v238_v10 = vld [vmem:[#allocation9 + $0x80] sm:$0xff]  ;;  %vm397_vm0 = vcmask 1043456   ;;  %v3457_v15 = vmov 0   ;;  %v239_v22 = vld [vmem:[#allocation9 + $0x88] sm:$0xff]  ;;  %v244_v7 = vlaneseq }
  0x2b   :  { %v230_v11 = vld [vmem:[#allocation9 + $0x40] sm:$0xff]  ;;  %v2255_v12 = vcombine.high %v238_v10, %v238_v10  ;;  %v2254_v13 = vcombine.low %v238_v10, %v238_v10  ;;  %454 = vmatprep.mubr.bf16.mxu0 %v3457_v15  ;;  %474 = vmatprep.mubr.bf16.mxu1 %v3457_v15  ;;  %v240_v23 = vld [vmem:[#allocation9 + $0x90] sm:$0xff]  ;;  %v2257_v29 = vcombine.high %v239_v22, %v239_v22  ;;  %v231_v32 = vld [vmem:[#allocation9 + $0x48] sm:$0xff]  ;;  %vm384_vm1 = vcmask 326656  }
  0x2c   :  { %v234_v14 = vld [vmem:[#allocation9 + $0x60] sm:$0xff]  ;;  %v2256_v30 = vcombine.low %v239_v22, %v239_v22  ;;  %v2259_v31 = vcombine.high %v240_v23, %v240_v23  ;;  %v235_v33 = vld [vmem:[#allocation9 + $0x68] sm:$0xff]  ;;  %v2258_v34 = vcombine.low %v240_v23, %v240_v23  ;;  %v232_v37 = vld [vmem:[#allocation9 + $0x50] sm:$0xff]  ;;  %v2952_v8 = vshrl.u32 %v244_v7, 7 }
  0x2d   :  { %v2247_v16 = vcombine.high %v230_v11, %v234_v14  ;;  %v222_v17 = vld [vmem:[#allocation9] sm:$0xff]  ;;  %2262 = vmatprep.subr.msk.bf16.mxu0 %vm397_vm0, %v2255_v12  ;;  %2457 = vmatprep.subr.msk.bf16.mxu1 %vm397_vm0, %v2255_v12  ;;  %v399_v19 = vsel %vm397_vm0, %v2254_v13, 0  ;;  %v2246_v20 = vcombine.low %v230_v11, %v234_v14  ;;  %v236_v38 = vld [vmem:[#allocation9 + $0x70] sm:$0xff]  ;;  %v2249_v40 = vcombine.high %v231_v32, %v235_v33  ;;  %v223_v41 = vld [vmem:[#allocation9 + $0x8] sm:$0xff] }
  0x2e   :  { %v226_v18 = vld [vmem:[#allocation9 + $0x20] sm:$0xff]  ;;  %433 = vmatpush1.bf16.msra.mxu0 %v399_v19  ;;  %2460 = vmatpush1.bf16.msra.mxu1 %v399_v19  ;;  %v405_v39 = vsel %vm397_vm0, %v2256_v30, 0  ;;  %v227_v42 = vld [vmem:[#allocation9 + $0x28] sm:$0xff]  ;;  %v411_v43 = vsel %vm397_vm0, %v2258_v34, 0  ;;  %v2251_v44 = vcombine.high %v232_v37, %v236_v38  ;;  %v224_v46 = vld [vmem:[#allocation9 + $0x10] sm:$0xff]  ;;  %v2248_v48 = vcombine.low %v231_v32, %v235_v33 }
  0x2f   :  { %434 = vmatprep.subr.bf16.mxu0 %v2247_v16  ;;  %2458 = vmatprep.subr.bf16.mxu1 %v2247_v16  ;;  %v2239_v21 = vcombine.high %v222_v17, %v226_v18  ;;  %v210_v24 = vld [vmem:[%s3448_s0] sm:$0xff]  ;;  %v2238_v25 = vcombine.low %v222_v17, %v226_v18  ;;  %v211_v26 = vld [vmem:[%s3448_s0 + $0x8] sm:$0xff]  ;;  %v216_v45 = vld [vmem:[%s3448_s0 + $0x30] sm:$0xff]  ;;  %v2241_v52 = vcombine.high %v223_v41, %v227_v42  ;;  %v246_v9 = vsub.s32 0, %v2952_v8 }
  0x30   :  { %v214_v27 = vld [vmem:[%s3448_s0 + $0x20] sm:$0xff]  ;;  %v215_v28 = vld [vmem:[%s3448_s0 + $0x28] sm:$0xff]  ;;  %v2892_v35 = vpack.c.bf16 %v211_v26, %v210_v24  ;;  %v228_v47 = vld [vmem:[#allocation9 + $0x30] sm:$0xff]  ;;  %v2250_v53 = vcombine.low %v232_v37, %v236_v38  ;;  %v2240_v58 = vcombine.low %v223_v41, %v227_v42  ;;  %v250_v11 = vsub.s32 1, %v2952_v8 }
  0x31   :  { %v2894_v36 = vpack.c.bf16 %v215_v28, %v214_v27  ;;  %v217_v49 = vld [vmem:[%s3448_s0 + $0x38] sm:$0xff]  ;;  %v212_v50 = vld [vmem:[%s3448_s0 + $0x10] sm:$0xff]  ;;  %v2243_v55 = vcombine.high %v224_v46, %v228_v47  ;;  %v2242_v60 = vcombine.low %v224_v46, %v228_v47  ;;  %v2958_v10 = vld [vmem:[%s3450_s2] sm:$0xff]  ;;  %v254_v34 = vsub.s32 2, %v2952_v8 }
  0x32   :  { %435 = vmatpush1.bf16.msra.mxu0 %v2246_v20  ;;  %2461 = vmatpush1.bf16.msra.mxu1 %v2246_v20  ;;  %v213_v51 = vld [vmem:[%s3448_s0 + $0x18] sm:$0xff]  ;;  %v221_v56 = vpack.c.bf16 %v217_v49, %v216_v45  ;;  %v247_v12 = vrot.slane %v2958_v10, %v246_v9  ;;  %v251_v13 = vrot.slane %v2958_v10, %v250_v11 }
  0x33   :  { %436 = vmatprep.subr.bf16.mxu0 %v2239_v21  ;;  %2459 = vmatprep.subr.bf16.mxu1 %v2239_v21  ;;  %v241_v54 = vld [vmem:[#allocation9 + $0x98] sm:$0xff]  ;;  %v219_v57 = vpack.c.bf16 %v213_v51, %v212_v50 }
  0x34   :  { %v2261_v59 = vcombine.high %v241_v54, %v241_v54  ;;  %v2260_v61 = vcombine.low %v241_v54, %v241_v54  ;;  %v233_v62 = vld [vmem:[#allocation9 + $0x58] sm:$0xff] }
  0x35   :  { %v237_v63 = vld [vmem:[#allocation9 + $0x78] sm:$0xff] }
  0x36   :  { %437 = vmatpush1.bf16.msra.mxu0 %v2238_v25  ;;  %2462 = vmatpush1.bf16.msra.mxu1 %v2238_v25  ;;  %v417_v0 = vsel %vm397_vm0, %v2260_v61, 0  ;;  %v2253_v1 = vcombine.high %v233_v62, %v237_v63  ;;  %v225_v2 = vld [vmem:[#allocation9 + $0x18] sm:$0xff]  ;;  %v2252_v4 = vcombine.low %v233_v62, %v237_v63 }
  0x37   :  { %2267 = vmatprep.subr.msk.bf16.mxu1 %vm397_vm0, %v2257_v29  ;;  %2272 = vmatprep.subr.msk.bf16.mxu0 %vm397_vm0, %v2259_v31  ;;  %v229_v3 = vld [vmem:[#allocation9 + $0x38] sm:$0xff] }
  0x38   :  { %v2245_v5 = vcombine.high %v225_v2, %v229_v3  ;;  %v2244_v6 = vcombine.low %v225_v2, %v229_v3 }
  0x39   :  { %2263 = vmatmul.mubr.msk.bf16.vlgmr.msra.gmra.mxu0 %vm384_vm1, %v2892_v35  ;;  %2265 = vmatmul.mubr.msk.bf16.vlgmr.msra.gmra.mxu1 %vm384_vm1, %v2894_v36 }
  0x3a   :  { %506 = vmatpush1.bf16.msra.mxu1 %v405_v39  ;;  %484 = vmatprep.mubr.bf16.mxu1 %v3457_v15  ;;  %v258_v39 = vsub.s32 3, %v2952_v8 }
  0x3b   :  { %507 = vmatprep.subr.bf16.mxu1 %v2249_v40  ;;  %579 = vmatpush1.bf16.msra.mxu0 %v411_v43 }
  0x3c   :  { %464 = vmatprep.mubr.bf16.mxu0 %v3457_v15  ;;  %580 = vmatprep.subr.bf16.mxu0 %v2251_v44  ;;  %v2988_v44 = vrot.slane %v2958_v10, %v254_v34  ;;  %v2995_v49 = vrot.slane %v2958_v10, %v258_v39 }
  0x3e   :  { %508 = vmatpush1.bf16.msra.mxu1 %v2248_v48 }
  0x3f   :  { %509 = vmatprep.subr.bf16.mxu1 %v2241_v52  ;;  %581 = vmatpush1.bf16.msra.mxu0 %v2250_v53 }
  0x40   :  { %582 = vmatprep.subr.bf16.mxu0 %v2243_v55 }
  0x41   :  { %2266 = vmatmul.mubr.msk.bf16.gmra.mxu1 %vm384_vm1, %v221_v56  ;;  %2264 = vmatmul.mubr.msk.bf16.gmra.mxu0 %vm384_vm1, %v219_v57 }
  0x42   :  { %510 = vmatpush1.bf16.msra.mxu1 %v2240_v58  ;;  %527 = vmatprep.mubr.bf16.mxu1 %v3457_v15 }
  0x43   :  { %2277 = vmatprep.subr.msk.bf16.mxu1 %vm397_vm0, %v2261_v59  ;;  %583 = vmatpush1.bf16.msra.mxu0 %v2242_v60 }
  0x44   :  { %600 = vmatprep.mubr.bf16.mxu0 %v3457_v15 }
  0x49   :  { %2268 = vmatmul.mubr.msk.bf16.vlgmr.msra.gmra.mxu1 %vm384_vm1, %v2892_v35  ;;  %2273 = vmatmul.mubr.msk.bf16.vlgmr.msra.gmra.mxu0 %vm384_vm1, %v2892_v35 }
  0x4a   :  { %652 = vmatpush1.bf16.msra.mxu1 %v417_v0  ;;  %537 = vmatprep.mubr.bf16.mxu1 %v3457_v15 }
  0x4b   :  { %653 = vmatprep.subr.bf16.mxu1 %v2253_v1  ;;  %610 = vmatprep.mubr.bf16.mxu0 %v3457_v15 }
  0x4e   :  { %654 = vmatpush1.bf16.msra.mxu1 %v2252_v4 }
  0x4f   :  { %655 = vmatprep.subr.bf16.mxu1 %v2245_v5 }
  0x51   :  { %2269 = vmatmul.mubr.msk.bf16.gmra.mxu1 %vm384_vm1, %v219_v57  ;;  %2274 = vmatmul.mubr.msk.bf16.gmra.mxu0 %vm384_vm1, %v219_v57 }
  0x52   :  { %547 = vmatprep.mubr.bf16.mxu1 %v3457_v15  ;;  %656 = vmatpush1.bf16.msra.mxu1 %v2244_v6 }
  0x53   :  { %620 = vmatprep.mubr.bf16.mxu0 %v3457_v15 }
  0x59   :  { %2270 = vmatmul.mubr.msk.bf16.gmra.mxu1 %vm384_vm1, %v2894_v36  ;;  %2275 = vmatmul.mubr.msk.bf16.gmra.mxu0 %vm384_vm1, %v2894_v36 }
  0x5a   :  { %557 = vmatprep.mubr.bf16.mxu1 %v3457_v15  ;;  %630 = vmatprep.mubr.bf16.mxu0 %v3457_v15 }
  0x61   :  { %2271 = vmatmul.mubr.msk.bf16.gmra.mxu1 %vm384_vm1, %v221_v56  ;;  %2276 = vmatmul.mubr.msk.bf16.gmra.mxu0 %vm384_vm1, %v221_v56 }
  0x62   :  { %673 = vmatprep.mubr.bf16.mxu1 %v3457_v15 }
  0x69   :  { %2278 = vmatmul.mubr.msk.bf16.vlgmr.msra.gmra.mxu1 %vm384_vm1, %v2892_v35 }
  0x6a   :  { %683 = vmatprep.mubr.bf16.mxu1 %v3457_v15 }
  0x71   :  { %2279 = vmatmul.mubr.msk.bf16.gmra.mxu1 %vm384_vm1, %v219_v57 }
  0x72   :  { %693 = vmatprep.mubr.bf16.mxu1 %v3457_v15 }
  0x79   :  { %2280 = vmatmul.mubr.msk.bf16.gmra.mxu1 %vm384_vm1, %v2894_v36 }
  0x7a   :  { %703 = vmatprep.mubr.bf16.mxu1 %v3457_v15 }
  0x81   :  { %2281 = vmatmul.mubr.msk.bf16.gmra.mxu1 %vm384_vm1, %v221_v56 }
  0xf9   :  { %v456_v14 = vpop.f32.mrf.mxu0  ;;  %v476_v16 = vpop.f32.mrf.mxu1 }
  0xfa   :  { %v457_v17 = vadd.f32 %v456_v14, %v247_v12  ;;  %v2963_v18 = vadd.f32 %v476_v16, %v247_v12 }
  0xfb   :  { %v478_v19 = vpop.f32.mrf.mxu1  ;;  %v458_v20 = vpop.f32.mrf.mxu0 }
  0xfc   :  { %v2282_v21 = vmul.f32 -1.442695, %v457_v17  ;;  %v2965_v22 = vadd.f32 %v478_v19, %v251_v13 }
  0xfd   :  { %v480_v23 = vpop.f32.mrf.mxu1  ;;  %v460_v24 = vpop.f32.mrf.mxu0 }
  0xfe   :  { %2480 = vpow2.f32 %v2282_v21  ;;  %v2967_v25 = vadd.f32 %v480_v23, %v247_v12  ;;  %v2969_v26 = vadd.f32 %v460_v24, %v247_v12 }
  0xff   :  { %v482_v27 = vpop.f32.mrf.mxu1  ;;  %v462_v28 = vpop.f32.mrf.mxu0 }
 0x100   :  { %3459 = vst [vmem:[#allocation29_spill] sm:$0xff] %v2967_v25  ;;  %v2971_v29 = vadd.f32 %v482_v27, %v251_v13  ;;  %v2973_v30 = vadd.f32 %v462_v28, %v251_v13 }
 0x101   :  { %v486_v31 = vpop.f32.mrf.mxu1  ;;  %v466_v32 = vpop.f32.mrf.mxu0 }
 0x102   :  { %3460 = vst [vmem:[#allocation30_spill] sm:$0xff] %v2971_v29  ;;  %v2975_v33 = vadd.f32 %v486_v31, %v247_v12  ;;  %v2978_v35 = vadd.f32 %v466_v32, %v247_v12 }
 0x103   :  { %v488_v36 = vpop.f32.mrf.mxu1  ;;  %v468_v37 = vpop.f32.mrf.mxu0 }
 0x104   :  { %3461 = vst [vmem:[#allocation31_spill] sm:$0xff] %v2975_v33  ;;  %v2980_v38 = vadd.f32 %v488_v36, %v251_v13  ;;  %v2983_v40 = vadd.f32 %v468_v37, %v251_v13 }
 0x105   :  { %v490_v41 = vpop.f32.mrf.mxu1  ;;  %v470_v42 = vpop.f32.mrf.mxu0 }
 0x106   :  { %3462 = vst [vmem:[#allocation32_spill] sm:$0xff] %v2980_v38  ;;  %v2985_v43 = vadd.f32 %v490_v41, %v247_v12  ;;  %v2990_v45 = vadd.f32 %v470_v42, %v247_v12 }
 0x107   :  { %v492_v46 = vpop.f32.mrf.mxu1  ;;  %v472_v47 = vpop.f32.mrf.mxu0 }
 0x108   :  { %3463 = vst [vmem:[#allocation33_spill] sm:$0xff] %v2985_v43  ;;  %v2992_v48 = vadd.f32 %v492_v46, %v251_v13  ;;  %v2997_v50 = vadd.f32 %v472_v47, %v251_v13 }
 0x109   :  { %v529_v51 = vpop.f32.mrf.mxu1  ;;  %v602_v52 = vpop.f32.mrf.mxu0 }
 0x10a   :  { %3464 = vst [vmem:[#allocation34_spill] sm:$0xff] %v2992_v48  ;;  %v530_v53 = vadd.f32 %v529_v51, %v2988_v44 }
 0x10b   :  { %v2481_v54 = vpop.eup %2480  ;;  %v531_v55 = vpop.f32.mrf.mxu1 }
 0x10c   :  { %v604_v56 = vpop.f32.mrf.mxu0  ;;  %v784_v57 = vadd.f32 1.0, %v2481_v54  ;;  %v532_v58 = vadd.f32 %v531_v55, %v2995_v49  ;;  %2482 = vtanh.f32 %v530_v53  ;;  %v262_v55 = vsub.s32 4, %v2952_v8 }
 0x10d   :  { %v533_v59 = vpop.f32.mrf.mxu1 }
 0x10e   :  { %v606_v60 = vpop.f32.mrf.mxu0  ;;  %2484 = vrcp.f32 %v784_v57  ;;  %v2283_v61 = vmul.f32 -1.442695, %v532_v58  ;;  %v3002_v62 = vadd.f32 %v533_v59, %v2988_v44 }
 0x10f   :  { %v535_v63 = vpop.f32.mrf.mxu1 }
 0x110   :  { %v608_v0 = vpop.f32.mrf.mxu0  ;;  %2486 = vpow2.f32 %v2283_v61  ;;  %v3005_v1 = vadd.f32 %v535_v63, %v2995_v49  ;;  %v263_v61 = vrot.slane %v2958_v10, %v262_v55 }
 0x111   :  { %v539_v2 = vpop.f32.mrf.mxu1 }
 0x112   :  { %v612_v3 = vpop.f32.mrf.mxu0  ;;  %v3008_v4 = vadd.f32 %v539_v2, %v2988_v44 }
 0x113   :  { %v541_v5 = vpop.f32.mrf.mxu1 }
 0x114   :  { %v614_v6 = vpop.f32.mrf.mxu0  ;;  %v3011_v7 = vadd.f32 %v541_v5, %v2995_v49 }
 0x115   :  { %v543_v9 = vpop.f32.mrf.mxu1 }
 0x116   :  { %v616_v11 = vpop.f32.mrf.mxu0  ;;  %v3014_v12 = vadd.f32 %v543_v9, %v2988_v44 }
 0x117   :  { %v545_v13 = vpop.f32.mrf.mxu1 }
 0x118   :  { %v618_v14 = vpop.f32.mrf.mxu0  ;;  %v3017_v16 = vadd.f32 %v545_v13, %v2995_v49 }
 0x119   :  { %v549_v17 = vpop.f32.mrf.mxu1  ;;  %v2483_v20 = vpop.eup %2482 }
 0x11a   :  { %v622_v19 = vpop.f32.mrf.mxu0  ;;  %v3020_v21 = vadd.f32 %v549_v17, %v2988_v44 }
 0x11b   :  { %v2485_v23 = vpop.eup %2484  ;;  %v551_v24 = vpop.f32.mrf.mxu1 }
 0x11c   :  { %3465 = vst [vmem:[#allocation35_spill] sm:$0xff] %v3020_v21  ;;  %v624_v27 = vpop.f32.mrf.mxu0  ;;  %v3022_v28 = vmul.f32 %v2485_v23, %v2483_v20  ;;  %v3025_v31 = vadd.f32 %v551_v24, %v2995_v49 }
 0x11d   :  { %v2487_v32 = vpop.eup %2486  ;;  %v553_v34 = vpop.f32.mrf.mxu1 }
 0x11e   :  { %3466 = vst [vmem:[#allocation36_spill] sm:$0xff] %v3025_v31  ;;  %v626_v36 = vpop.f32.mrf.mxu0  ;;  %v792_v37 = vadd.f32 1.0, %v2487_v32  ;;  %v3028_v39 = vadd.f32 %v553_v34, %v2988_v44  ;;  %2488 = vtanh.f32 %v3022_v28 }
 0x11f   :  { %v555_v41 = vpop.f32.mrf.mxu1 }
 0x120   :  { %3467 = vst [vmem:[#allocation37_spill] sm:$0xff] %v3028_v39  ;;  %v628_v42 = vpop.f32.mrf.mxu0  ;;  %2490 = vrcp.f32 %v792_v37  ;;  %v3032_v46 = vadd.f32 %v555_v41, %v2995_v49  ;;  %v274_v37 = vsub.s32 7, %v2952_v8 }
 0x121   :  { %v559_v47 = vpop.f32.mrf.mxu1 }
 0x122   :  { %3468 = vst [vmem:[#allocation38_spill] sm:$0xff] %v3032_v46  ;;  %v632_v51 = vpop.f32.mrf.mxu0  ;;  %v3035_v52 = vadd.f32 %v559_v47, %v2988_v44 }
 0x123   :  { %v561_v53 = vpop.f32.mrf.mxu1 }
 0x124   :  { %3469 = vst [vmem:[#allocation39_spill] sm:$0xff] %v3035_v52  ;;  %v634_v54 = vpop.f32.mrf.mxu0  ;;  %v3039_v56 = vadd.f32 %v561_v53, %v2995_v49  ;;  %v275_v53 = vrot.slane %v2958_v10, %v274_v37 }
 0x125   :  { %v563_v57 = vpop.f32.mrf.mxu1 }
 0x126   :  { %3470 = vst [vmem:[#allocation40_spill] sm:$0xff] %v3039_v56  ;;  %v636_v58 = vpop.f32.mrf.mxu0  ;;  %v3042_v59 = vadd.f32 %v563_v57, %v2988_v44 }
 0x127   :  { %v565_v60 = vpop.f32.mrf.mxu1  ;;  %v637_v5 = vadd.f32 %v636_v58, %v263_v61 }
 0x128   :  { %3471 = vst [vmem:[#allocation41_spill] sm:$0xff] %v3042_v59  ;;  %v638_v63 = vpop.f32.mrf.mxu0  ;;  %v3046_v0 = vadd.f32 %v565_v60, %v2995_v49  ;;  %v270_v49 = vsub.s32 6, %v2952_v8 }
 0x129   :  { %v675_v2 = vpop.f32.mrf.mxu1  ;;  %v2284_v17 = vmul.f32 -1.442695, %v637_v5 }
 0x12a   :  { %3472 = vst [vmem:[#allocation42_spill] sm:$0xff] %v3046_v0  ;;  %v271_v42 = vrot.slane %v2958_v10, %v270_v49 }
 0x12b   :  { %v677_v3 = vpop.f32.mrf.mxu1  ;;  %v2489_v6 = vpop.eup %2488  ;;  %2492 = vpow2.f32 %v2284_v17 }
 0x12d   :  { %v2491_v9 = vpop.eup %2490  ;;  %v679_v11 = vpop.f32.mrf.mxu1 }
 0x12e   :  { %v3048_v13 = vmul.f32 %v2491_v9, %v2489_v6 }
 0x12f   :  { %v681_v14 = vpop.f32.mrf.mxu1 }
 0x131   :  { %v685_v19 = vpop.f32.mrf.mxu1 }
 0x133   :  { %v687_v44 = vpop.f32.mrf.mxu1 }
 0x135   :  { %v689_v20 = vpop.f32.mrf.mxu1 }
 0x137   :  { %v691_v23 = vpop.f32.mrf.mxu1 }
 0x138   :  { %v2493_v36 = vpop.eup %2492 }
 0x139   :  { %v695_v24 = vpop.f32.mrf.mxu1  ;;  %v803_v47 = vadd.f32 1.0, %v2493_v36 }
 0x13b   :  { %v697_v27 = vpop.f32.mrf.mxu1  ;;  %2494 = vrcp.f32 %v803_v47 }
 0x13d   :  { %v699_v32 = vpop.f32.mrf.mxu1 }
 0x13f   :  { %v701_v34 = vpop.f32.mrf.mxu1 }
 0x141   :  { %v705_v41 = vpop.f32.mrf.mxu1 }
 0x143   :  { %v707_v51 = vpop.f32.mrf.mxu1 }
 0x145   :  { %v709_v54 = vpop.f32.mrf.mxu1 }
 0x146   :  { %v710_v55 = vadd.f32 %v709_v54, %v271_v42 }
 0x147   :  { %v711_v57 = vpop.f32.mrf.mxu1 }
 0x148   :  { %2496 = vtanh.f32 %v710_v55  ;;  %v712_v58 = vadd.f32 %v711_v57, %v275_v53  ;;  %v2495_v61 = vpop.eup %2494 }
 0x14a   :  { %v2285_v60 = vmul.f32 -1.442695, %v712_v58 }
 0x14c   :  { %2498 = vpow2.f32 %v2285_v60 }
 0x155   :  { %v2497_v63 = vpop.eup %2496 }
 0x156   :  { %v807_v2 = vmul.f32 %v2497_v63, %v2495_v61 }
 0x158   :  { %2500 = vtanh.f32 %v807_v2 }
 0x159   :  { %v2499_v3 = vpop.eup %2498 }
 0x15a   :  { %v811_v8 = vadd.f32 1.0, %v2499_v3 }
 0x15c   :  { %2502 = vrcp.f32 %v811_v8 }
 0x165   :  { %v2501_v5 = vpop.eup %2500 }
 0x169   :  { %v2503_v6 = vpop.eup %2502 }
 0x16a   :  { %v3054_v9 = vmul.f32 %v2503_v6, %v2501_v5 }
 0x16c   :  { %3473 = vst [vmem:[#allocation43_spill] sm:$0xff] %v3054_v9 }
 0x16d   :  { %2770 = dma.done.wait [#allocation8], 4096 }
 0x16e   :  { %2771 = vsyncadd [#allocation8], 4294963200  ;;  %1049 = vmatprep.mubr.bf16.mxu0 %v3457_v15  ;;  %1090 = vmatprep.mubr.bf16.mxu1 %v3457_v15  ;;  %v3058_v10 = vld [vmem:[#allocation3 + $0xe4] ss:$16 sps:$4 sm:$0xff]   ;;  %v3060_v11 = vld [vmem:[#allocation3 + $0xe0] ss:$16 sps:$4 sm:$0xff]   ;;  %v824_v6 = vpack.c.bf16 %v3048_v13, %v3048_v13 }
 0x16f   :  { %1017 = vmatprep.subr.bf16.mxu0 %v3058_v10  ;;  %v3063_v14 = vld [vmem:[#allocation3 + $0xc4] ss:$16 sps:$4 sm:$0xff]   ;;  %v3066_v17 = vld [vmem:[#allocation3 + $0xc0] ss:$16 sps:$4 sm:$0xff]   ;;  %v3071_v44 = vld [vmem:[#allocation3 + $0xec] ss:$16 sps:$4 sm:$0xff]  }
 0x170   :  { %1018 = vmatpush1.bf16.msra.mxu0 %v3060_v11  ;;  %v3069_v19 = vld [vmem:[#allocation3 + $0xa4] ss:$16 sps:$4 sm:$0xff]   ;;  %v3073_v20 = vld [vmem:[#allocation3 + $0xe8] ss:$16 sps:$4 sm:$0xff]   ;;  %v3076_v23 = vld [vmem:[#allocation3 + $0xa0] ss:$16 sps:$4 sm:$0xff]   ;;  %1058 = vmatprep.subr.bf16.mxu1 %v3071_v44 }
 0x171   :  { %1019 = vmatprep.subr.bf16.mxu0 %v3063_v14  ;;  %v3080_v24 = vld [vmem:[#allocation3 + $0x84] ss:$16 sps:$4 sm:$0xff]   ;;  %1059 = vmatpush1.bf16.msra.mxu1 %v3073_v20  ;;  %v3083_v27 = vld [vmem:[#allocation3 + $0xcc] ss:$16 sps:$4 sm:$0xff]   ;;  %v3085_v32 = vld [vmem:[#allocation3 + $0xc8] ss:$16 sps:$4 sm:$0xff]  }
 0x172   :  { %1060 = vmatprep.subr.bf16.mxu1 %v3083_v27  ;;  %v3089_v49 = vld [vmem:[#allocation3 + $0x80] ss:$16 sps:$4 sm:$0xff]   ;;  %v3091_v34 = vld [vmem:[#allocation3 + $0x64] ss:$16 sps:$4 sm:$0xff]   ;;  %v3093_v36 = vld [vmem:[#allocation3 + $0xac] ss:$16 sps:$4 sm:$0xff]  }
 0x173   :  { %v3097_v37 = vld [vmem:[#allocation3 + $0xa8] ss:$16 sps:$4 sm:$0xff]   ;;  %v3100_v41 = vld [vmem:[#allocation3 + $0x8c] ss:$16 sps:$4 sm:$0xff]   ;;  %v3103_v42 = vld [vmem:[#allocation3 + $0x60] ss:$16 sps:$4 sm:$0xff]  }
 0x174   :  { %1020 = vmatpush1.bf16.msra.mxu0 %v3066_v17  ;;  %v3106_v47 = vld [vmem:[#allocation3 + $0x44] ss:$16 sps:$4 sm:$0xff]   ;;  %v3109_v51 = vld [vmem:[#allocation3 + $0x88] ss:$16 sps:$4 sm:$0xff]   ;;  %v3112_v53 = vld [vmem:[#allocation3 + $0x6c] ss:$16 sps:$4 sm:$0xff]  }
 0x175   :  { %1021 = vmatprep.subr.bf16.mxu0 %v3069_v19  ;;  %1061 = vmatpush1.bf16.msra.mxu1 %v3085_v32  ;;  %v3115_v54 = vld [vmem:[#allocation3 + $0x40] ss:$16 sps:$4 sm:$0xff]   ;;  %v3117_v55 = vld [vmem:[#allocation3 + $0x24] ss:$16 sps:$4 sm:$0xff]   ;;  %v3121_v57 = vld [vmem:[#allocation3 + $0x68] ss:$16 sps:$4 sm:$0xff]  }
 0x176   :  { %1062 = vmatprep.subr.bf16.mxu1 %v3093_v36  ;;  %v3124_v58 = vld [vmem:[#allocation3 + $0x4c] ss:$16 sps:$4 sm:$0xff]   ;;  %v3127_v60 = vld [vmem:[#allocation3 + $0x20] ss:$16 sps:$4 sm:$0xff]   ;;  %v3130_v61 = vld [vmem:[#allocation3 + $0x4] ss:$16 sps:$4 sm:$0xff]  }
 0x177   :  { %v3133_v63 = vld [vmem:[#allocation3 + $0x48] ss:$16 sps:$4 sm:$0xff]   ;;  %v3136_v2 = vld [vmem:[#allocation3 + $0x2c] ss:$16 sps:$4 sm:$0xff]   ;;  %v3139_v3 = vld [vmem:[#allocation3] ss:$16 sps:$4 sm:$0xff]  }
 0x178   :  { %1022 = vmatpush1.bf16.msra.mxu0 %v3076_v23  ;;  %v3143_v8 = vld [vmem:[#allocation3 + $0x28] ss:$16 sps:$4 sm:$0xff]   ;;  %v3146_v5 = vld [vmem:[#allocation3 + $0xc] ss:$16 sps:$4 sm:$0xff]   ;;  %v3474_v9 = vmov 0  }
 0x179   :  { %1023 = vmatprep.subr.bf16.mxu0 %v3080_v24  ;;  %1063 = vmatpush1.bf16.msra.mxu1 %v3097_v37  ;;  %v3152_v15 = vld [vmem:[#allocation3 + $0x8] ss:$16 sps:$4 sm:$0xff]  }
 0x17a   :  { %1064 = vmatprep.subr.bf16.mxu1 %v3100_v41 }
 0x17c   :  { %1024 = vmatpush1.bf16.msra.mxu0 %v3089_v49 }
 0x17d   :  { %1025 = vmatprep.subr.bf16.mxu0 %v3091_v34  ;;  %1065 = vmatpush1.bf16.msra.mxu1 %v3109_v51 }
 0x17e   :  { %1066 = vmatprep.subr.bf16.mxu1 %v3112_v53 }
 0x180   :  { %1026 = vmatpush1.bf16.msra.mxu0 %v3103_v42 }
 0x181   :  { %1027 = vmatprep.subr.bf16.mxu0 %v3106_v47  ;;  %1067 = vmatpush1.bf16.msra.mxu1 %v3121_v57 }
 0x182   :  { %1068 = vmatprep.subr.bf16.mxu1 %v3124_v58 }
 0x184   :  { %1028 = vmatpush1.bf16.msra.mxu0 %v3115_v54 }
 0x185   :  { %1029 = vmatprep.subr.bf16.mxu0 %v3117_v55  ;;  %1069 = vmatpush1.bf16.msra.mxu1 %v3133_v63 }
 0x186   :  { %1070 = vmatprep.subr.bf16.mxu1 %v3136_v2 }
 0x188   :  { %1030 = vmatpush1.bf16.msra.mxu0 %v3127_v60 }
 0x189   :  { %1031 = vmatprep.subr.bf16.mxu0 %v3130_v61  ;;  %1071 = vmatpush1.bf16.msra.mxu1 %v3143_v8 }
 0x18a   :  { %1072 = vmatprep.subr.bf16.mxu1 %v3146_v5 }
 0x18c   :  { %1032 = vmatpush1.bf16.msra.mxu0 %v3139_v3 }
 0x18d   :  { %1132 = vmatprep.subr.bf16.mxu0 %v3058_v10  ;;  %1073 = vmatpush1.bf16.msra.mxu1 %v3152_v15 }
 0x18e   :  { %1173 = vmatprep.subr.bf16.mxu1 %v3071_v44 }
 0x18f   :  { %1050 = vmatmul.mubr.bf16.vlgmr.msra.gmra.mxu0 %v824_v6 }
 0x190   :  { %1133 = vmatpush1.bf16.msra.mxu0 %v3060_v11  ;;  %1164 = vmatprep.mubr.bf16.mxu0 %v3474_v9 }
 0x191   :  { %1134 = vmatprep.subr.bf16.mxu0 %v3063_v14  ;;  %1091 = vmatmul.mubr.bf16.vlgmr.msra.gmra.mxu1 %v824_v6 }
 0x192   :  { %1174 = vmatpush1.bf16.msra.mxu1 %v3073_v20  ;;  %1205 = vmatprep.mubr.bf16.mxu1 %v3474_v9 }
 0x193   :  { %1175 = vmatprep.subr.bf16.mxu1 %v3083_v27 }
 0x194   :  { %1135 = vmatpush1.bf16.msra.mxu0 %v3066_v17 }
 0x195   :  { %1136 = vmatprep.subr.bf16.mxu0 %v3069_v19 }
 0x196   :  { %1176 = vmatpush1.bf16.msra.mxu1 %v3085_v32 }
 0x197   :  { %1177 = vmatprep.subr.bf16.mxu1 %v3093_v36 }
 0x198   :  { %1137 = vmatpush1.bf16.msra.mxu0 %v3076_v23 }
 0x199   :  { %1138 = vmatprep.subr.bf16.mxu0 %v3080_v24 }
 0x19a   :  { %1178 = vmatpush1.bf16.msra.mxu1 %v3097_v37 }
 0x19b   :  { %1179 = vmatprep.subr.bf16.mxu1 %v3100_v41 }
 0x19c   :  { %1139 = vmatpush1.bf16.msra.mxu0 %v3089_v49 }
 0x19d   :  { %1140 = vmatprep.subr.bf16.mxu0 %v3091_v34 }
 0x19e   :  { %1180 = vmatpush1.bf16.msra.mxu1 %v3109_v51 }
 0x19f   :  { %1181 = vmatprep.subr.bf16.mxu1 %v3112_v53 }
 0x1a0   :  { %1141 = vmatpush1.bf16.msra.mxu0 %v3103_v42 }
 0x1a1   :  { %1142 = vmatprep.subr.bf16.mxu0 %v3106_v47 }
 0x1a2   :  { %1182 = vmatpush1.bf16.msra.mxu1 %v3121_v57 }
 0x1a3   :  { %1183 = vmatprep.subr.bf16.mxu1 %v3124_v58 }
 0x1a4   :  { %1143 = vmatpush1.bf16.msra.mxu0 %v3115_v54 }
 0x1a5   :  { %1144 = vmatprep.subr.bf16.mxu0 %v3117_v55 }
 0x1a6   :  { %1184 = vmatpush1.bf16.msra.mxu1 %v3133_v63 }
 0x1a7   :  { %1185 = vmatprep.subr.bf16.mxu1 %v3136_v2 }
 0x1a8   :  { %1145 = vmatpush1.bf16.msra.mxu0 %v3127_v60 }
 0x1a9   :  { %1146 = vmatprep.subr.bf16.mxu0 %v3130_v61 }
 0x1aa   :  { %1186 = vmatpush1.bf16.msra.mxu1 %v3143_v8 }
 0x1ab   :  { %1187 = vmatprep.subr.bf16.mxu1 %v3146_v5 }
 0x1ac   :  { %1147 = vmatpush1.bf16.msra.mxu0 %v3139_v3 }
 0x1ad   :  { %1247 = vmatprep.subr.bf16.mxu0 %v3058_v10 }
 0x1ae   :  { %1188 = vmatpush1.bf16.msra.mxu1 %v3152_v15 }
 0x1af   :  { %1288 = vmatprep.subr.bf16.mxu1 %v3071_v44 }
 0x24f   :  { %v1051_v13 = vpop.f32.mrf.mxu0 }
 0x250   :  { %v1099_v6 = vadd.f32 %v1051_v13, %v2969_v26 }
 0x251   :  { %v1053_v59 = vpop.f32.mrf.mxu0  ;;  %v1092_v56 = vpop.f32.mrf.mxu1 }
 0x252   :  { %v2318_v0 = vmul.f32 -1.442695, %v1099_v6  ;;  %v1100_v48 = vadd.f32 %v1053_v59, %v2973_v30  ;;  %v1101_v25 = vadd.f32 %v1092_v56, %v3002_v62 }
 0x253   :  { %v1055_v43 = vpop.f32.mrf.mxu0  ;;  %v1094_v33 = vpop.f32.mrf.mxu1 }
 0x254   :  { %2552 = vpow2.f32 %v2318_v0  ;;  %v2319_v52 = vmul.f32 -1.442695, %v1100_v48  ;;  %v1102_v29 = vadd.f32 %v1094_v33, %v3005_v1 }
 0x255   :  { %v1056_v38 = vpop.f32.mrf.mxu0  ;;  %v1096_v39 = vpop.f32.mrf.mxu1 }
 0x256   :  { %2554 = vpow2.f32 %v2319_v52  ;;  %v2320_v21 = vmul.f32 -1.442695, %v1102_v29 }
 0x257   :  { %v1097_v46 = vpop.f32.mrf.mxu1  ;;  %2556 = vtanh.f32 %v1101_v25 }
 0x258   :  { %2558 = vpow2.f32 %v2320_v21 }
 0x261   :  { %v2553_v31 = vpop.eup %2552 }
 0x262   :  { %v1106_v26 = vadd.f32 1.0, %v2553_v31 }
 0x263   :  { %v2555_v13 = vpop.eup %2554 }
 0x264   :  { %2560 = vrcp.f32 %v1106_v26  ;;  %v1112_v30 = vadd.f32 1.0, %v2555_v13  ;;  %v2557_v43 = vpop.eup %2556 }
 0x265   :  { %v2559_v48 = vpop.eup %2558 }
 0x266   :  { %2562 = vrcp.f32 %v1112_v30  ;;  %v1119_v59 = vadd.f32 1.0, %v2559_v48 }
 0x268   :  { %2564 = vrcp.f32 %v1119_v59 }
 0x271   :  { %v2561_v38 = vpop.eup %2560 }
 0x272   :  { %v1123_v46 = vmul.f32 %v2561_v38, %v2557_v43 }
 0x273   :  { %v2563_v52 = vpop.eup %2562 }
 0x274   :  { %v1122_v39 = vmul.f32 %v2563_v52, %v3022_v28 }
 0x275   :  { %v2565_v29 = vpop.eup %2564 }
 0x276   :  { %v3197_v33 = vadd.f32 %v1123_v46, %v1122_v39 }
 0x278   :  { %2566 = vtanh.f32 %v3197_v33 }
 0x285   :  { %v2567_v25 = vpop.eup %2566 }
 0x286   :  { %v1126_v62 = vmul.f32 %v2567_v25, %v2565_v29 }
 0x288   :  { %v1131_v1 = vpack.c.bf16 %v1126_v62, %v1126_v62 }
 0x28a   :  { %1165 = vmatmul.mubr.bf16.vlgmr.msra.gmra.mxu0 %v1131_v1  ;;  %1206 = vmatmul.mubr.bf16.vlgmr.msra.gmra.mxu1 %v1131_v1 }
 0x28b   :  { %1248 = vmatpush1.bf16.msra.mxu0 %v3060_v11  ;;  %1289 = vmatpush1.bf16.msra.mxu1 %v3073_v20 }
 0x28c   :  { %1249 = vmatprep.subr.bf16.mxu0 %v3063_v14  ;;  %1290 = vmatprep.subr.bf16.mxu1 %v3083_v27 }
 0x28d   :  { %1279 = vmatprep.mubr.bf16.mxu0 %v3474_v9  ;;  %1320 = vmatprep.mubr.bf16.mxu1 %v3474_v9 }
 0x28f   :  { %1250 = vmatpush1.bf16.msra.mxu0 %v3066_v17  ;;  %1291 = vmatpush1.bf16.msra.mxu1 %v3085_v32 }
 0x290   :  { %1251 = vmatprep.subr.bf16.mxu0 %v3069_v19  ;;  %1292 = vmatprep.subr.bf16.mxu1 %v3093_v36 }
 0x293   :  { %1252 = vmatpush1.bf16.msra.mxu0 %v3076_v23  ;;  %1293 = vmatpush1.bf16.msra.mxu1 %v3097_v37 }
 0x294   :  { %1253 = vmatprep.subr.bf16.mxu0 %v3080_v24  ;;  %1294 = vmatprep.subr.bf16.mxu1 %v3100_v41 }
 0x297   :  { %1254 = vmatpush1.bf16.msra.mxu0 %v3089_v49  ;;  %1295 = vmatpush1.bf16.msra.mxu1 %v3109_v51 }
 0x298   :  { %1255 = vmatprep.subr.bf16.mxu0 %v3091_v34  ;;  %1296 = vmatprep.subr.bf16.mxu1 %v3112_v53 }
 0x29b   :  { %1256 = vmatpush1.bf16.msra.mxu0 %v3103_v42  ;;  %1297 = vmatpush1.bf16.msra.mxu1 %v3121_v57 }
 0x29c   :  { %1257 = vmatprep.subr.bf16.mxu0 %v3106_v47  ;;  %1298 = vmatprep.subr.bf16.mxu1 %v3124_v58 }
 0x29f   :  { %1258 = vmatpush1.bf16.msra.mxu0 %v3115_v54  ;;  %1299 = vmatpush1.bf16.msra.mxu1 %v3133_v63 }
 0x2a0   :  { %1259 = vmatprep.subr.bf16.mxu0 %v3117_v55  ;;  %1300 = vmatprep.subr.bf16.mxu1 %v3136_v2 }
 0x2a3   :  { %1260 = vmatpush1.bf16.msra.mxu0 %v3127_v60  ;;  %1301 = vmatpush1.bf16.msra.mxu1 %v3143_v8 }
 0x2a4   :  { %1261 = vmatprep.subr.bf16.mxu0 %v3130_v61  ;;  %1302 = vmatprep.subr.bf16.mxu1 %v3146_v5 }
 0x2a7   :  { %1262 = vmatpush1.bf16.msra.mxu0 %v3139_v3  ;;  %1303 = vmatpush1.bf16.msra.mxu1 %v3152_v15 }
 0x2a8   :  { %1362 = vmatprep.subr.bf16.mxu0 %v3058_v10  ;;  %1403 = vmatprep.subr.bf16.mxu1 %v3071_v44 }
 0x34a   :  { %v1166_v21 = vpop.f32.mrf.mxu0  ;;  %v1207_v28 = vpop.f32.mrf.mxu1 }
 0x34b   :  { %v1214_v31 = vadd.f32 %v1166_v21, %v2978_v35  ;;  %v1216_v46 = vadd.f32 %v1207_v28, %v3008_v4 }
 0x34c   :  { %v1168_v56 = vpop.f32.mrf.mxu0  ;;  %v1209_v0 = vpop.f32.mrf.mxu1 }
 0x34d   :  { %v2321_v6 = vmul.f32 -1.442695, %v1214_v31  ;;  %v1215_v26 = vadd.f32 %v1168_v56, %v2983_v40  ;;  %v1217_v52 = vadd.f32 %v1209_v0, %v3011_v7 }
 0x34e   :  { %v1170_v13 = vpop.f32.mrf.mxu0  ;;  %v1211_v30 = vpop.f32.mrf.mxu1 }
 0x34f   :  { %2568 = vpow2.f32 %v2321_v6  ;;  %v2322_v43 = vmul.f32 -1.442695, %v1215_v26  ;;  %v2323_v59 = vmul.f32 -1.442695, %v1217_v52 }
 0x350   :  { %v1171_v48 = vpop.f32.mrf.mxu0  ;;  %v1212_v38 = vpop.f32.mrf.mxu1 }
 0x351   :  { %2570 = vpow2.f32 %v2322_v43 }
 0x352   :  { %2572 = vpow2.f32 %v2323_v59 }
 0x35c   :  { %v2569_v39 = vpop.eup %2568 }
 0x35d   :  { %v1221_v29 = vadd.f32 1.0, %v2569_v39 }
 0x35e   :  { %v2571_v35 = vpop.eup %2570 }
 0x35f   :  { %2574 = vrcp.f32 %v1221_v29  ;;  %v1227_v25 = vadd.f32 1.0, %v2571_v35  ;;  %v2573_v40 = vpop.eup %2572 }
 0x360   :  { %2576 = vtanh.f32 %v1216_v46  ;;  %v1234_v31 = vadd.f32 1.0, %v2573_v40 }
 0x361   :  { %2578 = vrcp.f32 %v1227_v25 }
 0x362   :  { %2580 = vrcp.f32 %v1234_v31 }
 0x36c   :  { %v2575_v62 = vpop.eup %2574 }
 0x36d   :  { %v2577_v1 = vpop.eup %2576 }
 0x36e   :  { %v2579_v21 = vpop.eup %2578  ;;  %v1238_v56 = vmul.f32 %v2577_v1, %v2575_v62 }
 0x36f   :  { %v1237_v6 = vmul.f32 %v2579_v21, %v3197_v33  ;;  %v2581_v4 = vpop.eup %2580 }
 0x371   :  { %v3239_v7 = vadd.f32 %v1238_v56, %v1237_v6 }
 0x373   :  { %2582 = vtanh.f32 %v3239_v7 }
 0x380   :  { %v2583_v28 = vpop.eup %2582 }
 0x381   :  { %v1241_v0 = vmul.f32 %v2583_v28, %v2581_v4 }
 0x383   :  { %v1246_v26 = vpack.c.bf16 %v1241_v0, %v1241_v0 }
 0x385   :  { %1280 = vmatmul.mubr.bf16.vlgmr.msra.gmra.mxu0 %v1246_v26  ;;  %1321 = vmatmul.mubr.bf16.vlgmr.msra.gmra.mxu1 %v1246_v26 }
 0x386   :  { %1363 = vmatpush1.bf16.msra.mxu0 %v3060_v11  ;;  %1404 = vmatpush1.bf16.msra.mxu1 %v3073_v20 }
 0x387   :  { %1364 = vmatprep.subr.bf16.mxu0 %v3063_v14  ;;  %1405 = vmatprep.subr.bf16.mxu1 %v3083_v27 }
 0x388   :  { %1394 = vmatprep.mubr.bf16.mxu0 %v3474_v9  ;;  %1435 = vmatprep.mubr.bf16.mxu1 %v3474_v9 }
 0x38a   :  { %1365 = vmatpush1.bf16.msra.mxu0 %v3066_v17  ;;  %1406 = vmatpush1.bf16.msra.mxu1 %v3085_v32 }
 0x38b   :  { %1366 = vmatprep.subr.bf16.mxu0 %v3069_v19  ;;  %1407 = vmatprep.subr.bf16.mxu1 %v3093_v36 }
 0x38e   :  { %1367 = vmatpush1.bf16.msra.mxu0 %v3076_v23  ;;  %1408 = vmatpush1.bf16.msra.mxu1 %v3097_v37 }
 0x38f   :  { %1368 = vmatprep.subr.bf16.mxu0 %v3080_v24  ;;  %1409 = vmatprep.subr.bf16.mxu1 %v3100_v41 }
 0x392   :  { %1369 = vmatpush1.bf16.msra.mxu0 %v3089_v49  ;;  %1410 = vmatpush1.bf16.msra.mxu1 %v3109_v51 }
 0x393   :  { %1370 = vmatprep.subr.bf16.mxu0 %v3091_v34  ;;  %1411 = vmatprep.subr.bf16.mxu1 %v3112_v53 }
 0x396   :  { %1371 = vmatpush1.bf16.msra.mxu0 %v3103_v42  ;;  %1412 = vmatpush1.bf16.msra.mxu1 %v3121_v57 }
 0x397   :  { %1372 = vmatprep.subr.bf16.mxu0 %v3106_v47  ;;  %1413 = vmatprep.subr.bf16.mxu1 %v3124_v58 }
 0x39a   :  { %1373 = vmatpush1.bf16.msra.mxu0 %v3115_v54  ;;  %1414 = vmatpush1.bf16.msra.mxu1 %v3133_v63 }
 0x39b   :  { %1374 = vmatprep.subr.bf16.mxu0 %v3117_v55  ;;  %1415 = vmatprep.subr.bf16.mxu1 %v3136_v2 }
 0x39e   :  { %1375 = vmatpush1.bf16.msra.mxu0 %v3127_v60  ;;  %1416 = vmatpush1.bf16.msra.mxu1 %v3143_v8 }
 0x39f   :  { %1376 = vmatprep.subr.bf16.mxu0 %v3130_v61  ;;  %1417 = vmatprep.subr.bf16.mxu1 %v3146_v5 }
 0x3a2   :  { %1377 = vmatpush1.bf16.msra.mxu0 %v3139_v3  ;;  %1418 = vmatpush1.bf16.msra.mxu1 %v3152_v15 }
 0x3a3   :  { %1477 = vmatprep.subr.bf16.mxu0 %v3058_v10  ;;  %1518 = vmatprep.subr.bf16.mxu1 %v3071_v44 }
 0x445   :  { %v1281_v33 = vpop.f32.mrf.mxu0  ;;  %v1322_v13 = vpop.f32.mrf.mxu1 }
 0x446   :  { %v1329_v30 = vadd.f32 %v1281_v33, %v2990_v45  ;;  %v1331_v1 = vadd.f32 %v1322_v13, %v3014_v12 }
 0x447   :  { %v1283_v43 = vpop.f32.mrf.mxu0  ;;  %v1324_v48 = vpop.f32.mrf.mxu1 }
 0x448   :  { %v2324_v38 = vmul.f32 -1.442695, %v1329_v30  ;;  %v1330_v52 = vadd.f32 %v1283_v43, %v2997_v50  ;;  %v1332_v25 = vadd.f32 %v1324_v48, %v3017_v16 }
 0x449   :  { %v1285_v59 = vpop.f32.mrf.mxu0  ;;  %v1326_v39 = vpop.f32.mrf.mxu1 }
 0x44a   :  { %2584 = vpow2.f32 %v2324_v38  ;;  %v2325_v46 = vmul.f32 -1.442695, %v1330_v52  ;;  %v2326_v40 = vmul.f32 -1.442695, %v1332_v25 }
 0x44b   :  { %v1286_v29 = vpop.f32.mrf.mxu0  ;;  %v1327_v35 = vpop.f32.mrf.mxu1 }
 0x44c   :  { %2586 = vpow2.f32 %v2325_v46 }
 0x44d   :  { %2588 = vpow2.f32 %v2326_v40 }
 0x457   :  { %v2585_v62 = vpop.eup %2584 }
 0x458   :  { %v1336_v21 = vadd.f32 1.0, %v2585_v62  ;;  %v3475_v62 = vld [vmem:[#allocation36_spill] sm:$0xff] }
 0x459   :  { %v2587_v45 = vpop.eup %2586 }
 0x45a   :  { %2590 = vrcp.f32 %v1336_v21  ;;  %v1342_v31 = vadd.f32 1.0, %v2587_v45  ;;  %v2589_v50 = vpop.eup %2588 }
 0x45b   :  { %2592 = vtanh.f32 %v1331_v1  ;;  %v1349_v28 = vadd.f32 1.0, %v2589_v50 }
 0x45c   :  { %2594 = vrcp.f32 %v1342_v31  ;;  %v3476_v31 = vld [vmem:[#allocation35_spill] sm:$0xff] }
 0x45d   :  { %2596 = vrcp.f32 %v1349_v28 }
 0x467   :  { %v2591_v56 = vpop.eup %2590 }
 0x468   :  { %v2593_v6 = vpop.eup %2592 }
 0x469   :  { %v2595_v4 = vpop.eup %2594  ;;  %v1353_v0 = vmul.f32 %v2593_v6, %v2591_v56 }
 0x46a   :  { %v1352_v26 = vmul.f32 %v2595_v4, %v3239_v7  ;;  %v2597_v12 = vpop.eup %2596 }
 0x46c   :  { %v3281_v16 = vadd.f32 %v1353_v0, %v1352_v26 }
 0x46e   :  { %2598 = vtanh.f32 %v3281_v16 }
 0x47b   :  { %v2599_v33 = vpop.eup %2598 }
 0x47c   :  { %v1356_v13 = vmul.f32 %v2599_v33, %v2597_v12 }
 0x47e   :  { %v1361_v30 = vpack.c.bf16 %v1356_v13, %v1356_v13 }
 0x480   :  { %1395 = vmatmul.mubr.bf16.vlgmr.msra.gmra.mxu0 %v1361_v30  ;;  %1436 = vmatmul.mubr.bf16.vlgmr.msra.gmra.mxu1 %v1361_v30 }
 0x481   :  { %1478 = vmatpush1.bf16.msra.mxu0 %v3060_v11  ;;  %1519 = vmatpush1.bf16.msra.mxu1 %v3073_v20 }
 0x482   :  { %1479 = vmatprep.subr.bf16.mxu0 %v3063_v14  ;;  %1520 = vmatprep.subr.bf16.mxu1 %v3083_v27 }
 0x483   :  { %1509 = vmatprep.mubr.bf16.mxu0 %v3474_v9  ;;  %1550 = vmatprep.mubr.bf16.mxu1 %v3474_v9 }
 0x485   :  { %1480 = vmatpush1.bf16.msra.mxu0 %v3066_v17  ;;  %1521 = vmatpush1.bf16.msra.mxu1 %v3085_v32 }
 0x486   :  { %1481 = vmatprep.subr.bf16.mxu0 %v3069_v19  ;;  %1522 = vmatprep.subr.bf16.mxu1 %v3093_v36 }
 0x489   :  { %1482 = vmatpush1.bf16.msra.mxu0 %v3076_v23  ;;  %1523 = vmatpush1.bf16.msra.mxu1 %v3097_v37 }
 0x48a   :  { %1483 = vmatprep.subr.bf16.mxu0 %v3080_v24  ;;  %1524 = vmatprep.subr.bf16.mxu1 %v3100_v41 }
 0x48d   :  { %1484 = vmatpush1.bf16.msra.mxu0 %v3089_v49  ;;  %1525 = vmatpush1.bf16.msra.mxu1 %v3109_v51 }
 0x48e   :  { %1485 = vmatprep.subr.bf16.mxu0 %v3091_v34  ;;  %1526 = vmatprep.subr.bf16.mxu1 %v3112_v53 }
 0x491   :  { %1486 = vmatpush1.bf16.msra.mxu0 %v3103_v42  ;;  %1527 = vmatpush1.bf16.msra.mxu1 %v3121_v57 }
 0x492   :  { %1487 = vmatprep.subr.bf16.mxu0 %v3106_v47  ;;  %1528 = vmatprep.subr.bf16.mxu1 %v3124_v58 }
 0x495   :  { %1488 = vmatpush1.bf16.msra.mxu0 %v3115_v54  ;;  %1529 = vmatpush1.bf16.msra.mxu1 %v3133_v63 }
 0x496   :  { %1489 = vmatprep.subr.bf16.mxu0 %v3117_v55  ;;  %1530 = vmatprep.subr.bf16.mxu1 %v3136_v2 }
 0x499   :  { %1490 = vmatpush1.bf16.msra.mxu0 %v3127_v60  ;;  %1531 = vmatpush1.bf16.msra.mxu1 %v3143_v8 }
 0x49a   :  { %1491 = vmatprep.subr.bf16.mxu0 %v3130_v61  ;;  %1532 = vmatprep.subr.bf16.mxu1 %v3146_v5 }
 0x49d   :  { %1492 = vmatpush1.bf16.msra.mxu0 %v3139_v3  ;;  %1533 = vmatpush1.bf16.msra.mxu1 %v3152_v15 }
 0x49e   :  { %1592 = vmatprep.subr.bf16.mxu0 %v3058_v10  ;;  %1633 = vmatprep.subr.bf16.mxu1 %v3071_v44 }
 0x540   :  { %v1396_v7 = vpop.f32.mrf.mxu0  ;;  %v1437_v43 = vpop.f32.mrf.mxu1 }
 0x541   :  { %v1444_v48 = vadd.f32 %v1396_v7, %v2963_v18  ;;  %v1446_v50 = vadd.f32 %v1437_v43, %v3476_v31  ;;  %v3479_v31 = vld [vmem:[#allocation38_spill] sm:$0xff] }
 0x542   :  { %v1398_v38 = vpop.f32.mrf.mxu0  ;;  %v1439_v52 = vpop.f32.mrf.mxu1 }
 0x543   :  { %v2327_v59 = vmul.f32 -1.442695, %v1444_v48  ;;  %v1445_v39 = vadd.f32 %v1398_v38, %v2965_v22  ;;  %v1447_v1 = vadd.f32 %v1439_v52, %v3475_v62  ;;  %v3477_v52 = vld [vmem:[#allocation29_spill] sm:$0xff] }
 0x544   :  { %v1400_v46 = vpop.f32.mrf.mxu0  ;;  %v1441_v29 = vpop.f32.mrf.mxu1 }
 0x545   :  { %2600 = vpow2.f32 %v2327_v59  ;;  %v2328_v35 = vmul.f32 -1.442695, %v1445_v39  ;;  %v2329_v21 = vmul.f32 -1.442695, %v1447_v1 }
 0x546   :  { %v1401_v25 = vpop.f32.mrf.mxu0  ;;  %v1442_v40 = vpop.f32.mrf.mxu1 }
 0x547   :  { %2602 = vpow2.f32 %v2328_v35  ;;  %v3478_v35 = vld [vmem:[#allocation30_spill] sm:$0xff] }
 0x548   :  { %2604 = vpow2.f32 %v2329_v21 }
 0x552   :  { %v2601_v45 = vpop.eup %2600 }
 0x553   :  { %v1451_v56 = vadd.f32 1.0, %v2601_v45 }
 0x554   :  { %v2603_v18 = vpop.eup %2602 }
 0x555   :  { %2606 = vrcp.f32 %v1451_v56  ;;  %v1457_v6 = vadd.f32 1.0, %v2603_v18  ;;  %v2605_v22 = vpop.eup %2604  ;;  %v3480_v56 = vld [vmem:[#allocation37_spill] sm:$0xff] }
 0x556   :  { %2608 = vtanh.f32 %v1446_v50  ;;  %v1464_v26 = vadd.f32 1.0, %v2605_v22 }
 0x557   :  { %2610 = vrcp.f32 %v1457_v6 }
 0x558   :  { %2612 = vrcp.f32 %v1464_v26 }
 0x562   :  { %v2607_v4 = vpop.eup %2606 }
 0x563   :  { %v2609_v28 = vpop.eup %2608 }
 0x564   :  { %v2611_v0 = vpop.eup %2610  ;;  %v1468_v12 = vmul.f32 %v2609_v28, %v2607_v4 }
 0x565   :  { %v1467_v33 = vmul.f32 %v2611_v0, %v3281_v16  ;;  %v2613_v30 = vpop.eup %2612 }
 0x567   :  { %v3323_v13 = vadd.f32 %v1468_v12, %v1467_v33 }
 0x569   :  { %2614 = vtanh.f32 %v3323_v13 }
 0x576   :  { %v2615_v7 = vpop.eup %2614 }
 0x577   :  { %v1471_v43 = vmul.f32 %v2615_v7, %v2613_v30 }
 0x579   :  { %v1476_v48 = vpack.c.bf16 %v1471_v43, %v1471_v43 }
 0x57b   :  { %1510 = vmatmul.mubr.bf16.vlgmr.msra.gmra.mxu0 %v1476_v48  ;;  %1551 = vmatmul.mubr.bf16.vlgmr.msra.gmra.mxu1 %v1476_v48 }
 0x57c   :  { %1593 = vmatpush1.bf16.msra.mxu0 %v3060_v11  ;;  %1634 = vmatpush1.bf16.msra.mxu1 %v3073_v20 }
 0x57d   :  { %1594 = vmatprep.subr.bf16.mxu0 %v3063_v14  ;;  %1635 = vmatprep.subr.bf16.mxu1 %v3083_v27 }
 0x57e   :  { %1624 = vmatprep.mubr.bf16.mxu0 %v3474_v9  ;;  %1665 = vmatprep.mubr.bf16.mxu1 %v3474_v9 }
 0x580   :  { %1595 = vmatpush1.bf16.msra.mxu0 %v3066_v17  ;;  %1636 = vmatpush1.bf16.msra.mxu1 %v3085_v32 }
 0x581   :  { %1596 = vmatprep.subr.bf16.mxu0 %v3069_v19  ;;  %1637 = vmatprep.subr.bf16.mxu1 %v3093_v36 }
 0x584   :  { %1597 = vmatpush1.bf16.msra.mxu0 %v3076_v23  ;;  %1638 = vmatpush1.bf16.msra.mxu1 %v3097_v37 }
 0x585   :  { %1598 = vmatprep.subr.bf16.mxu0 %v3080_v24  ;;  %1639 = vmatprep.subr.bf16.mxu1 %v3100_v41 }
 0x588   :  { %1599 = vmatpush1.bf16.msra.mxu0 %v3089_v49  ;;  %1640 = vmatpush1.bf16.msra.mxu1 %v3109_v51 }
 0x589   :  { %1600 = vmatprep.subr.bf16.mxu0 %v3091_v34  ;;  %1641 = vmatprep.subr.bf16.mxu1 %v3112_v53 }
 0x58c   :  { %1601 = vmatpush1.bf16.msra.mxu0 %v3103_v42  ;;  %1642 = vmatpush1.bf16.msra.mxu1 %v3121_v57 }
 0x58d   :  { %1602 = vmatprep.subr.bf16.mxu0 %v3106_v47  ;;  %1643 = vmatprep.subr.bf16.mxu1 %v3124_v58 }
 0x590   :  { %1603 = vmatpush1.bf16.msra.mxu0 %v3115_v54  ;;  %1644 = vmatpush1.bf16.msra.mxu1 %v3133_v63 }
 0x591   :  { %1604 = vmatprep.subr.bf16.mxu0 %v3117_v55  ;;  %1645 = vmatprep.subr.bf16.mxu1 %v3136_v2 }
 0x594   :  { %1605 = vmatpush1.bf16.msra.mxu0 %v3127_v60  ;;  %1646 = vmatpush1.bf16.msra.mxu1 %v3143_v8 }
 0x595   :  { %1606 = vmatprep.subr.bf16.mxu0 %v3130_v61  ;;  %1647 = vmatprep.subr.bf16.mxu1 %v3146_v5 }
 0x598   :  { %1607 = vmatpush1.bf16.msra.mxu0 %v3139_v3  ;;  %1648 = vmatpush1.bf16.msra.mxu1 %v3152_v15 }
 0x599   :  { %1707 = vmatprep.subr.bf16.mxu0 %v3058_v10  ;;  %1748 = vmatprep.subr.bf16.mxu1 %v3071_v44 }
 0x63b   :  { %v1511_v16 = vpop.f32.mrf.mxu0  ;;  %v1552_v38 = vpop.f32.mrf.mxu1 }
 0x63c   :  { %v1559_v59 = vadd.f32 %v1511_v16, %v3477_v52  ;;  %v1561_v18 = vadd.f32 %v1552_v38, %v3480_v56 }
 0x63d   :  { %v1513_v39 = vpop.f32.mrf.mxu0  ;;  %v1554_v46 = vpop.f32.mrf.mxu1 }
 0x63e   :  { %v2330_v29 = vmul.f32 -1.442695, %v1559_v59  ;;  %v1560_v25 = vadd.f32 %v1513_v39, %v3478_v35  ;;  %v1562_v10 = vadd.f32 %v1554_v46, %v3479_v31 }
 0x63f   :  { %v1515_v40 = vpop.f32.mrf.mxu0  ;;  %v1556_v62 = vpop.f32.mrf.mxu1 }
 0x640   :  { %2616 = vpow2.f32 %v2330_v29  ;;  %v2331_v1 = vmul.f32 -1.442695, %v1560_v25  ;;  %v2332_v50 = vmul.f32 -1.442695, %v1562_v10  ;;  %v3485_v25 = vld [vmem:[#allocation33_spill] sm:$0xff] }
 0x641   :  { %v1516_v21 = vpop.f32.mrf.mxu0  ;;  %v1557_v45 = vpop.f32.mrf.mxu1 }
 0x642   :  { %2618 = vpow2.f32 %v2331_v1  ;;  %v3486_v45 = vld [vmem:[#allocation34_spill] sm:$0xff] }
 0x643   :  { %2620 = vpow2.f32 %v2332_v50 }
 0x64d   :  { %v2617_v44 = vpop.eup %2616 }
 0x64e   :  { %v1566_v6 = vadd.f32 1.0, %v2617_v44 }
 0x64f   :  { %v2619_v22 = vpop.eup %2618 }
 0x650   :  { %2622 = vrcp.f32 %v1566_v6  ;;  %v1572_v4 = vadd.f32 1.0, %v2619_v22  ;;  %v2621_v28 = vpop.eup %2620  ;;  %v3487_v6 = vld [vmem:[#allocation42_spill] sm:$0xff] }
 0x651   :  { %2624 = vtanh.f32 %v1561_v18  ;;  %v1579_v33 = vadd.f32 1.0, %v2621_v28 }
 0x652   :  { %2626 = vrcp.f32 %v1572_v4 }
 0x653   :  { %2628 = vrcp.f32 %v1579_v33 }
 0x65d   :  { %v2623_v0 = vpop.eup %2622 }
 0x65e   :  { %v2625_v26 = vpop.eup %2624 }
 0x65f   :  { %v2627_v12 = vpop.eup %2626  ;;  %v1583_v30 = vmul.f32 %v2625_v26, %v2623_v0  ;;  %v3488_v0 = vld [vmem:[#allocation41_spill] sm:$0xff] }
 0x660   :  { %v1582_v7 = vmul.f32 %v2627_v12, %v3323_v13  ;;  %v2629_v48 = vpop.eup %2628 }
 0x662   :  { %v3365_v43 = vadd.f32 %v1583_v30, %v1582_v7 }
 0x664   :  { %2630 = vtanh.f32 %v3365_v43 }
 0x671   :  { %v2631_v16 = vpop.eup %2630 }
 0x672   :  { %v1586_v38 = vmul.f32 %v2631_v16, %v2629_v48 }
 0x674   :  { %v1591_v52 = vpack.c.bf16 %v1586_v38, %v1586_v38 }
 0x676   :  { %1625 = vmatmul.mubr.bf16.vlgmr.msra.gmra.mxu0 %v1591_v52  ;;  %1666 = vmatmul.mubr.bf16.vlgmr.msra.gmra.mxu1 %v1591_v52 }
 0x677   :  { %1708 = vmatpush1.bf16.msra.mxu0 %v3060_v11  ;;  %1749 = vmatpush1.bf16.msra.mxu1 %v3073_v20 }
 0x678   :  { %1709 = vmatprep.subr.bf16.mxu0 %v3063_v14  ;;  %1750 = vmatprep.subr.bf16.mxu1 %v3083_v27  ;;  %v3481_v14 = vld [vmem:[#allocation31_spill] sm:$0xff] }
 0x679   :  { %1739 = vmatprep.mubr.bf16.mxu0 %v3474_v9  ;;  %1780 = vmatprep.mubr.bf16.mxu1 %v3474_v9 }
 0x67b   :  { %1710 = vmatpush1.bf16.msra.mxu0 %v3066_v17  ;;  %1751 = vmatpush1.bf16.msra.mxu1 %v3085_v32 }
 0x67c   :  { %1711 = vmatprep.subr.bf16.mxu0 %v3069_v19  ;;  %1752 = vmatprep.subr.bf16.mxu1 %v3093_v36 }
 0x67f   :  { %1712 = vmatpush1.bf16.msra.mxu0 %v3076_v23  ;;  %1753 = vmatpush1.bf16.msra.mxu1 %v3097_v37 }
 0x680   :  { %1713 = vmatprep.subr.bf16.mxu0 %v3080_v24  ;;  %1754 = vmatprep.subr.bf16.mxu1 %v3100_v41  ;;  %v3482_v24 = vld [vmem:[#allocation32_spill] sm:$0xff] }
 0x681   :  { %v3483_v41 = vld [vmem:[#allocation40_spill] sm:$0xff] }
 0x683   :  { %1714 = vmatpush1.bf16.msra.mxu0 %v3089_v49  ;;  %1755 = vmatpush1.bf16.msra.mxu1 %v3109_v51  ;;  %v3484_v51 = vld [vmem:[#allocation39_spill] sm:$0xff] }
 0x684   :  { %1715 = vmatprep.subr.bf16.mxu0 %v3091_v34  ;;  %1756 = vmatprep.subr.bf16.mxu1 %v3112_v53 }
 0x687   :  { %1716 = vmatpush1.bf16.msra.mxu0 %v3103_v42  ;;  %1757 = vmatpush1.bf16.msra.mxu1 %v3121_v57 }
 0x688   :  { %1717 = vmatprep.subr.bf16.mxu0 %v3106_v47  ;;  %1758 = vmatprep.subr.bf16.mxu1 %v3124_v58 }
 0x68b   :  { %1718 = vmatpush1.bf16.msra.mxu0 %v3115_v54  ;;  %1759 = vmatpush1.bf16.msra.mxu1 %v3133_v63 }
 0x68c   :  { %1719 = vmatprep.subr.bf16.mxu0 %v3117_v55  ;;  %1760 = vmatprep.subr.bf16.mxu1 %v3136_v2 }
 0x68f   :  { %1720 = vmatpush1.bf16.msra.mxu0 %v3127_v60  ;;  %1761 = vmatpush1.bf16.msra.mxu1 %v3143_v8 }
 0x690   :  { %1721 = vmatprep.subr.bf16.mxu0 %v3130_v61  ;;  %1762 = vmatprep.subr.bf16.mxu1 %v3146_v5 }
 0x693   :  { %1722 = vmatpush1.bf16.msra.mxu0 %v3139_v3  ;;  %1763 = vmatpush1.bf16.msra.mxu1 %v3152_v15 }
 0x736   :  { %v1626_v9 = vpop.f32.mrf.mxu0  ;;  %v1667_v11 = vpop.f32.mrf.mxu1 }
 0x737   :  { %v1674_v17 = vadd.f32 %v1626_v9, %v3481_v14  ;;  %v1676_v53 = vadd.f32 %v1667_v11, %v3484_v51 }
 0x738   :  { %v1628_v19 = vpop.f32.mrf.mxu0  ;;  %v1669_v20 = vpop.f32.mrf.mxu1 }
 0x739   :  { %v2333_v23 = vmul.f32 -1.442695, %v1674_v17  ;;  %v1675_v27 = vadd.f32 %v1628_v19, %v3482_v24  ;;  %v1677_v42 = vadd.f32 %v1669_v20, %v3483_v41 }
 0x73a   :  { %v1630_v32 = vpop.f32.mrf.mxu0  ;;  %v1671_v49 = vpop.f32.mrf.mxu1 }
 0x73b   :  { %2632 = vpow2.f32 %v2333_v23  ;;  %v2334_v34 = vmul.f32 -1.442695, %v1675_v27  ;;  %v2335_v47 = vmul.f32 -1.442695, %v1677_v42 }
 0x73c   :  { %v1631_v36 = vpop.f32.mrf.mxu0  ;;  %v1672_v37 = vpop.f32.mrf.mxu1 }
 0x73d   :  { %2634 = vpow2.f32 %v2334_v34 }
 0x73e   :  { %2636 = vpow2.f32 %v2335_v47 }
 0x748   :  { %v2633_v15 = vpop.eup %2632 }
 0x749   :  { %v1681_v54 = vadd.f32 1.0, %v2633_v15 }
 0x74a   :  { %v2635_v55 = vpop.eup %2634 }
 0x74b   :  { %2638 = vrcp.f32 %v1681_v54  ;;  %v1687_v57 = vadd.f32 1.0, %v2635_v55  ;;  %v2637_v58 = vpop.eup %2636 }
 0x74c   :  { %2640 = vtanh.f32 %v1676_v53  ;;  %v1694_v2 = vadd.f32 1.0, %v2637_v58 }
 0x74d   :  { %2642 = vrcp.f32 %v1687_v57 }
 0x74e   :  { %2644 = vrcp.f32 %v1694_v2 }
 0x758   :  { %v2639_v60 = vpop.eup %2638 }
 0x759   :  { %v2641_v61 = vpop.eup %2640 }
 0x75a   :  { %v2643_v63 = vpop.eup %2642  ;;  %v1698_v3 = vmul.f32 %v2641_v61, %v2639_v60 }
 0x75b   :  { %v1697_v8 = vmul.f32 %v2643_v63, %v3365_v43  ;;  %v2645_v13 = vpop.eup %2644 }
 0x75d   :  { %v1699_v5 = vadd.f32 %v1698_v3, %v1697_v8 }
 0x75f   :  { %2646 = vtanh.f32 %v1699_v5 }
 0x76c   :  { %v2647_v59 = vpop.eup %2646 }
 0x76d   :  { %v1701_v39 = vmul.f32 %v2647_v59, %v2645_v13 }
 0x76f   :  { %v1706_v46 = vpack.c.bf16 %v1701_v39, %v1701_v39 }
 0x771   :  { %1740 = vmatmul.mubr.bf16.vlgmr.msra.gmra.mxu0 %v1706_v46  ;;  %1781 = vmatmul.mubr.bf16.vlgmr.msra.gmra.mxu1 %v1706_v46 }
 0x831   :  { %v1741_v29 = vpop.f32.mrf.mxu0  ;;  %v1782_v35 = vpop.f32.mrf.mxu1 }
 0x832   :  { %v1789_v40 = vadd.f32 %v1741_v29, %v3485_v25  ;;  %v1791_v26 = vadd.f32 %v1782_v35, %v3488_v0 }
 0x833   :  { %v1743_v62 = vpop.f32.mrf.mxu0  ;;  %v1784_v1 = vpop.f32.mrf.mxu1 }
 0x834   :  { %v2336_v21 = vmul.f32 -1.442695, %v1789_v40  ;;  %v1790_v31 = vadd.f32 %v1743_v62, %v3486_v45  ;;  %v1792_v22 = vadd.f32 %v1784_v1, %v3487_v6 }
 0x835   :  { %v1745_v10 = vpop.f32.mrf.mxu0  ;;  %v1786_v50 = vpop.f32.mrf.mxu1 }
 0x836   :  { %2648 = vpow2.f32 %v2336_v21  ;;  %v2337_v44 = vmul.f32 -1.442695, %v1790_v31  ;;  %v2338_v4 = vmul.f32 -1.442695, %v1792_v22 }
 0x837   :  { %v1746_v56 = vpop.f32.mrf.mxu0  ;;  %v1787_v18 = vpop.f32.mrf.mxu1 }
 0x838   :  { %2650 = vpow2.f32 %v2337_v44 }
 0x839   :  { %2652 = vpow2.f32 %v2338_v4 }
 0x843   :  { %v2649_v28 = vpop.eup %2648 }
 0x844   :  { %v1796_v12 = vadd.f32 1.0, %v2649_v28 }
 0x845   :  { %v2651_v33 = vpop.eup %2650 }
 0x846   :  { %2654 = vrcp.f32 %v1796_v12  ;;  %v1802_v30 = vadd.f32 1.0, %v2651_v33  ;;  %v2653_v7 = vpop.eup %2652 }
 0x847   :  { %2656 = vtanh.f32 %v1791_v26  ;;  %v1809_v38 = vadd.f32 1.0, %v2653_v7 }
 0x848   :  { %2658 = vrcp.f32 %v1802_v30 }
 0x849   :  { %2660 = vrcp.f32 %v1809_v38 }
 0x853   :  { %v2655_v43 = vpop.eup %2654 }
 0x854   :  { %v2657_v48 = vpop.eup %2656 }
 0x855   :  { %v2659_v16 = vpop.eup %2658  ;;  %v1813_v52 = vmul.f32 %v2657_v48, %v2655_v43 }
 0x856   :  { %v1812_v9 = vmul.f32 %v2659_v16, %v1699_v5  ;;  %v2661_v14 = vpop.eup %2660 }
 0x858   :  { %v1814_v11 = vadd.f32 %v1813_v52, %v1812_v9 }
 0x85a   :  { %2662 = vtanh.f32 %v1814_v11 }
 0x867   :  { %v2663_v17 = vpop.eup %2662 }
 0x868   :  { %v3409_v19 = vmul.f32 %v2663_v17, %v2661_v14 }
 0x869   :  { %2772 = dma.done.wait [#allocation8 + $0x1], 2048 }
 0x86a   :  { %2773 = vsyncadd [#allocation8 + $0x1], 4294965248 }
 0x86b   :  { %2774 = dma.done.wait [#allocation8 + $0x2], 16 }
 0x86c   :  { %2775 = vsyncadd [#allocation8 + $0x2], 4294967280 }
 0x86d   :  { %2776 = dma.done.wait [#allocation8 + $0x3], 1024 }
 0x86e   :  { %2777 = vsyncadd [#allocation8 + $0x3], 4294966272 }
 0x86f   :  { %2778 = dma.done.wait [#allocation8 + $0x4], 16 }
 0x870   :  { %2779 = vsyncadd [#allocation8 + $0x4], 4294967280  ;;  %v2788_v20 = vmov 0.0   ;;  %vm2789_vm2 = vmmov 0   ;;  %v2664_v23 = vld [vmem:[#allocation4 + $0x78] sm:$0xff]   ;;  %v2666_v27 = vld [vmem:[#allocation4 + $0x70] sm:$0xff]   ;;  %v1829_v60 = vpack.c.bf16 %v3409_v19, %v3409_v19 }
 0x871   :  { %2397 = vmatprep.subr.bf16.mxu0 %v2788_v20  ;;  %2417 = vmatprep.subr.bf16.mxu1 %v2788_v20  ;;  %v2665_v24 = vld [vmem:[#allocation4 + $0x38] sm:$0xff]   ;;  %v2667_v32 = vld [vmem:[#allocation4 + $0x30] sm:$0xff]   ;;  %v2668_v49 = vld [vmem:[#allocation4 + $0x68] sm:$0xff]   ;;  %s2790_s2 = smov [#allocation12]  }
 0x872   :  { %2413 = vmatprep.mubr.msk.bf16.mxu0 %vm2789_vm2, %v2788_v20  ;;  %2433 = vmatprep.mubr.msk.bf16.mxu1 %vm2789_vm2, %v2788_v20  ;;  %v2669_v34 = vld [vmem:[#allocation4 + $0x28] sm:$0xff]   ;;  %v2670_v36 = vld [vmem:[#allocation4 + $0x60] sm:$0xff]   ;;  %v2672_v41 = vld [vmem:[#allocation4 + $0x58] sm:$0xff]   ;;  %s2167_s28 = sshll.u32 %s2790_s2, 4  ;;  %s2168_s28 = int_to_ptr.vmem [resolvable:$true] %s2167_s28 }
 0x873   :  { %2398 = vmatpush3.bf16.msra.mxu0 %v2664_v23  ;;  %2418 = vmatpush3.bf16.msra.mxu1 %v2665_v24  ;;  %v2671_v37 = vld [vmem:[#allocation4 + $0x20] sm:$0xff]   ;;  %v2673_v42 = vld [vmem:[#allocation4 + $0x18] sm:$0xff]   ;;  %v2674_v47 = vld [vmem:[#allocation4 + $0x50] sm:$0xff]   ;;  %s2748_s5 = scalar_lea.vmem %s2168_s28, 128  ;;  %p2753_p2 = scmp.lt.s32.totalorder %s2168_s28, %s2168_s28 }
 0x874   :  { %2399 = vmatprep.subr.bf16.mxu0 %v2788_v20  ;;  %2419 = vmatprep.subr.bf16.mxu1 %v2788_v20  ;;  %v2675_v15 = vld [vmem:[#allocation4 + $0x10] sm:$0xff]   ;;  %v2676_v51 = vld [vmem:[#allocation4 + $0x48] sm:$0xff]   ;;  %v2678_v54 = vld [vmem:[#allocation4 + $0x40] sm:$0xff]   ;;  %p2749_p1 = scmp.ne.s32.totalorder %s2168_s28, %s2748_s5  ;;  %p2754_p3 = scmp.lt.s32.totalorder %s2748_s5, %s2748_s5 }
 0x875   :  { %v2677_v53 = vld [vmem:[#allocation4 + $0x8] sm:$0xff]   ;;  %v2679_v55 = vld [vmem:[#allocation4] sm:$0xff]   ;;  %v2681_v63 = vld [vmem:[#allocation6 + $0x30] sm:$0xff]  }
 0x876   :  { %v3489_v57 = vld [vmem:[#allocation43_spill] sm:$0xff]  ;;  %v2682_v2 = vld [vmem:[#allocation6 + $0x28] sm:$0xff]   ;;  %v2685_v5 = vld [vmem:[#allocation6 + $0x10] sm:$0xff]   ;;  %p2755_p4 = por %p2754_p3, %p2753_p2 }
 0x877   :  { %2400 = vmatpush3.bf16.msra.mxu0 %v2666_v27  ;;  %2420 = vmatpush3.bf16.msra.mxu1 %v2667_v32  ;;  %v1846_v58 = vpack.c.bf16 %v3489_v57, %v3489_v57  ;;  %v2680_v61 = vld [vmem:[#allocation6 + $0x38] sm:$0xff]   ;;  %v2683_v3 = vld [vmem:[#allocation6 + $0x20] sm:$0xff]   ;;  %v2686_v13 = vld [vmem:[#allocation6 + $0x8] sm:$0xff]  }
 0x878   :  { %2401 = vmatprep.subr.bf16.mxu0 %v2788_v20  ;;  %2421 = vmatprep.subr.bf16.mxu1 %v2788_v20  ;;  %v2684_v8 = vld [vmem:[#allocation6 + $0x18] sm:$0xff]   ;;  %v2687_v59 = vld [vmem:[#allocation6] sm:$0xff]   ;;  %p2756_p5 = pnand %p2755_p4, %p2749_p1 }
 0x879   :  { %v2355_v29 = vld [vmem:[#allocation5] ss:$0 sm:$0xff]  ;;  %v2356_v44 = vld [vmem:[#allocation7] ss:$0 sm:$0xff] }
 0x87b   :  { %2402 = vmatpush3.bf16.msra.mxu0 %v2668_v49  ;;  %2422 = vmatpush3.bf16.msra.mxu1 %v2669_v34 }
 0x87c   :  { %2403 = vmatprep.subr.bf16.mxu0 %v2788_v20  ;;  %2423 = vmatprep.subr.bf16.mxu1 %v2788_v20 }
 0x87f   :  { %2404 = vmatpush3.bf16.msra.mxu0 %v2670_v36  ;;  %2424 = vmatpush3.bf16.msra.mxu1 %v2671_v37 }
 0x880   :  { %2405 = vmatprep.subr.bf16.mxu0 %v2788_v20  ;;  %2425 = vmatprep.subr.bf16.mxu1 %v2788_v20 }
 0x883   :  { %2406 = vmatpush3.bf16.msra.mxu0 %v2672_v41  ;;  %2426 = vmatpush3.bf16.msra.mxu1 %v2673_v42 }
 0x884   :  { %2407 = vmatprep.subr.bf16.mxu0 %v2788_v20  ;;  %2427 = vmatprep.subr.bf16.mxu1 %v2788_v20 }
 0x887   :  { %2408 = vmatpush3.bf16.msra.mxu0 %v2674_v47  ;;  %2428 = vmatpush3.bf16.msra.mxu1 %v2675_v15 }
 0x888   :  { %2409 = vmatprep.subr.bf16.mxu0 %v2788_v20  ;;  %2429 = vmatprep.subr.bf16.mxu1 %v2788_v20 }
 0x88b   :  { %2410 = vmatpush3.bf16.msra.mxu0 %v2676_v51  ;;  %2430 = vmatpush3.bf16.msra.mxu1 %v2677_v53 }
 0x88c   :  { %2411 = vmatprep.subr.bf16.mxu0 %v2788_v20  ;;  %2431 = vmatprep.subr.bf16.mxu1 %v2788_v20 }
 0x88f   :  { %2412 = vmatpush3.bf16.msra.mxu0 %v2678_v54  ;;  %2432 = vmatpush3.bf16.msra.mxu1 %v2679_v55 }
 0x890   :  { %2437 = vmatprep.subr.bf16.mxu0 %v2788_v20 }
 0x892   :  { %2414 = vmatmul.mubr.bf16.vlgmr.msra.gmra.mxu0 %v1846_v58  ;;  %2434 = vmatmul.mubr.bf16.vlgmr.msra.gmra.mxu1 %v1829_v60 }
 0x893   :  { %2438 = vmatpush3.bf16.msra.mxu0 %v2680_v61  ;;  %2453 = vmatprep.mubr.msk.bf16.mxu0 %vm2789_vm2, %v2788_v20 }
 0x894   :  { %2439 = vmatprep.subr.bf16.mxu0 %v2788_v20 }
 0x897   :  { %2440 = vmatpush3.bf16.msra.mxu0 %v2681_v63 }
 0x898   :  { %2441 = vmatprep.subr.bf16.mxu0 %v2788_v20 }
 0x89b   :  { %2442 = vmatpush3.bf16.msra.mxu0 %v2682_v2 }
 0x89c   :  { %2443 = vmatprep.subr.bf16.mxu0 %v2788_v20 }
 0x89f   :  { %2444 = vmatpush3.bf16.msra.mxu0 %v2683_v3 }
 0x8a0   :  { %2445 = vmatprep.subr.bf16.mxu0 %v2788_v20 }
 0x8a3   :  { %2446 = vmatpush3.bf16.msra.mxu0 %v2684_v8 }
 0x8a4   :  { %2447 = vmatprep.subr.bf16.mxu0 %v2788_v20 }
 0x8a7   :  { %2448 = vmatpush3.bf16.msra.mxu0 %v2685_v5 }
 0x8a8   :  { %2449 = vmatprep.subr.bf16.mxu0 %v2788_v20 }
 0x8ab   :  { %2450 = vmatpush3.bf16.msra.mxu0 %v2686_v13 }
 0x8ac   :  { %2451 = vmatprep.subr.bf16.mxu0 %v2788_v20 }
 0x8af   :  { %2452 = vmatpush3.bf16.msra.mxu0 %v2687_v59 }
 0x952   :  { %v1945_v39 = vpop.f32.mrf.mxu0  ;;  %v2033_v46 = vpop.f32.mrf.mxu1 }
 0x953   :  { %v2034_v35 = vadd.f32 %v2033_v46, %v1945_v39 }
 0x954   :  { %v2415_v25 = vpop.f32.mrf.mxu0  ;;  %v2435_v40 = vpop.f32.mrf.mxu1 }
 0x955   :  { %v2046_v62 = vadd.f32 %v2355_v29, %v2034_v35 }
 0x956   :  { %v1948_v1 = vpop.f32.mrf.mxu0  ;;  %v2036_v21 = vpop.f32.mrf.mxu1 }
 0x957   :  { %v2047_v45 = vmax.f32 %v2046_v62, 0.0 }
 0x958   :  { %v2416_v31 = vpop.f32.mrf.mxu0  ;;  %v2436_v10 = vpop.f32.mrf.mxu1 }
 0x959   :  { %v2048_v50 = vpack.c.bf16 %v2047_v45, %v2047_v45 }
 0x95b   :  { %2454 = vmatmul.mubr.bf16.vlgmr.msra.gmra.mxu0 %v2048_v50 }
 0xa1b   :  { %v2154_v56 = vpop.f32.mrf.mxu0 }
 0xa1c   :  { %v2155_v18 = vadd.f32 %v2356_v44, %v2154_v56 }
 0xa1d   :  { %v2455_v6 = vpop.f32.mrf.mxu0 }
 0xa1e   :  { %2160 = vst [vmem:[#allocation12] sm:$0xff] %v2155_v18 }
 0xa1f   :  { %v2157_v22 = vpop.f32.mrf.mxu0 }
 0xa20   :  { %2759 = shalt.err (!%p2756_p5)
}
 0xa21   :  { %2170 = dma.vmem_to_hbm [thread:$0]  %s2168_s28, 128, %s3456_s8, [#allocation11]   ;;  %v2456_v4 = vpop.f32.mrf.mxu0 }
 0xa22   :  { %2780 = dma.done.wait [#allocation11], 128  }
 0xa23   :  { %2781 = vsyncadd [#allocation11], 4294967168 }
 0xa24   :  { %2174 = vsyncpa [#allocation10], 1 }
 0xa25   :  { %2175 = vsyncpa [#allocation11], 1 }
 0xa26   :  { %2176 = vsyncmov [#allocation8] }
 0xa29   :  { %s2177_s9 = vpop.sfrf %2176 }
 0xa2a   :  { %p2365_p6 = scmp.ne.s32.totalorder %s2177_s9, 0 }
 0xa2c   :  { %2181 = shalt.err (%p2365_p6)  }
 0xa2d   :  { %2183 = vsyncmov [#allocation8 + $0x1] }
 0xa30   :  { %s2184_s10 = vpop.sfrf %2183 }
 0xa31   :  { %p2366_p7 = scmp.ne.s32.totalorder %s2184_s10, 0 }
 0xa33   :  { %2188 = shalt.err (%p2366_p7)  }
 0xa34   :  { %2190 = vsyncmov [#allocation8 + $0x2] }
 0xa37   :  { %s2191_s11 = vpop.sfrf %2190 }
 0xa38   :  { %p2367_p8 = scmp.ne.s32.totalorder %s2191_s11, 0 }
 0xa3a   :  { %2195 = shalt.err (%p2367_p8)  }
 0xa3b   :  { %2197 = vsyncmov [#allocation8 + $0x3] }
 0xa3e   :  { %s2198_s12 = vpop.sfrf %2197 }
 0xa3f   :  { %p2368_p9 = scmp.ne.s32.totalorder %s2198_s12, 0 }
 0xa41   :  { %2202 = shalt.err (%p2368_p9)  }
 0xa42   :  { %2204 = vsyncmov [#allocation8 + $0x4] }
 0xa45   :  { %s2205_s8 = vpop.sfrf %2204 }
 0xa46   :  { %p2369_p10 = scmp.ne.s32.totalorder %s2205_s8, 0 }
 0xa48   :  { %2209 = shalt.err (%p2369_p10)  }

</bundles_post_ra>
